<compile_context>
chip_gen: v6e
topology: v6e:2x2x1
jax: 0.10.0
libtpu: 0.0.40
codegen_flags: <defaults>
</compile_context>

<pallas_src>
import math

import jax
import jax.numpy as jnp
from jax.experimental import pallas as pl
from jax.experimental.pallas import tpu as pltpu


def _upsample1d_kernel(x_ref, w_ref, s_ref, b_ref, out_ref):
    # x_ref:   (1, C, L)    native channels-first input tile (one batch element)
    # w_ref:   (4*C, C)     Wstack; rows [k*C:(k+1)*C] = weight[:, :, k].T  (C_out, C_in)
    # s_ref:   (4, L, 2L)   constant 0/1 scatter matrices: S_k[j, t] = (t == 2j + k - 1)
    # b_ref:   (C, 1)       bias column
    # out_ref: (1, C, 2L)   channels-first output tile, already interleaved
    c = x_ref.shape[1]
    x = x_ref[0]                                   # (C, L)
    w = w_ref[...]                                 # (4C, C), loaded once per step
    hi = jax.lax.Precision.HIGHEST                 # TODO(synk): bf16 / Precision.DEFAULT path
    f32 = jnp.float32                              #             when the surrounding net is bf16

    # Single fused channel-mixing matmul: P[k*C + co, j] = x[:, j] . W_k[:, co].
    p = jnp.dot(w, x, preferred_element_type=f32, precision=hi)          # (4C, L)

    # Scatter each kernel tap to its output position t = 2j + k - 1.  The S_k encode the
    # sequence-edge zero padding and the even/odd interleave, so this is the final layout.
    y = (jnp.dot(p[0 * c:1 * c], s_ref[0], preferred_element_type=f32, precision=hi)
         + jnp.dot(p[1 * c:2 * c], s_ref[1], preferred_element_type=f32, precision=hi)
         + jnp.dot(p[2 * c:3 * c], s_ref[2], preferred_element_type=f32, precision=hi)
         + jnp.dot(p[3 * c:4 * c], s_ref[3], preferred_element_type=f32, precision=hi))

    out_ref[0] = (y + b_ref[...]).astype(out_ref.dtype)


def upsample1d(x: jax.Array, weight: jax.Array, bias: jax.Array) -> jax.Array:
    """Pallas equivalent of nn.ConvTranspose1d(dim, dim, 4, 2, 1)(x).

    x:      (B, C, L)   float32
    weight: (C, C, 4)   PyTorch ConvTranspose1d layout (in_ch, out_ch, kernel)
    bias:   (C,)
    returns (B, C, 2*L) float32
    """
    b, c, l = x.shape
    assert weight.shape == (c, c, 4), weight.shape
    assert bias.shape == (c,), bias.shape
    f32 = jnp.float32

    x = x.astype(f32)                                                # no-op if already f32
    # Wstack[k*C + co, ci] = weight[ci, co, k]   (tiny: 4*C*C elements, built once).
    w_stack = jnp.transpose(weight.astype(f32), (2, 1, 0)).reshape(4 * c, c)
    # Constant scatter matrices S_k[j, t] = 1 iff t == 2j + k - 1 and 0 <= t < 2L.
    j = jnp.arange(l)[:, None]
    t = jnp.arange(2 * l)[None, :]
    scatter = jnp.stack([(t == 2 * j + (k - 1)) for k in range(4)], axis=0).astype(f32)
    b_col = bias.astype(f32).reshape(c, 1)

    # TODO(synk): for large L, add an L-tile grid axis with a 1-column halo (pl.Element
    #             offsets on a pre-padded x) and size tiles per generation (v7x: 64 MiB VMEM).
    # TODO(synk): for very large C, single-buffer the constant operands
    #             (pipeline_mode=pl.Buffered(1)) so double-buffered weights don't eat VMEM.
    return pl.pallas_call(
        _upsample1d_kernel,
        out_shape=jax.ShapeDtypeStruct((b, c, 2 * l), f32),
        grid=(b,),
        in_specs=[
            # Per-batch activation tile, native channels-first layout (no wrapper transpose).
            pl.BlockSpec((1, c, l), lambda i: (i, 0, 0)),
            # Constants: same block every grid step -> DMA'd once, stays resident in VMEM.
            pl.BlockSpec((4 * c, c), lambda i: (0, 0)),
            pl.BlockSpec((4, l, 2 * l), lambda i: (0, 0, 0)),
            pl.BlockSpec((c, 1), lambda i: (0, 0)),
        ],
        out_specs=pl.BlockSpec((1, c, 2 * l), lambda i: (i, 0, 0)),
        compiler_params=pltpu.CompilerParams(
            # Batch steps are independent: pipeline them and feed both v7x TensorCores.
            dimension_semantics=("parallel",),
            vmem_limit_bytes=32 * 1024 * 1024,
        ),
    )(x, w_stack, scatter, b_col)


def _reference(x: jax.Array, weight: jax.Array, bias: jax.Array) -> jax.Array:
    # ConvTranspose1d(stride=2, padding=1, K=4) == lhs-dilated conv with flipped kernel.
    w = jnp.flip(jnp.transpose(weight, (1, 0, 2)), axis=-1)   # (C_out, C_in, K)
    y = jax.lax.conv_general_dilated(
        x.astype(jnp.float32), w.astype(jnp.float32),
        window_strides=(1,), padding=[(2, 2)],
        lhs_dilation=(2,), rhs_dilation=(1,),
        dimension_numbers=("NCH", "OIH", "NCH"),
        precision=jax.lax.Precision.HIGHEST)
    return y + bias[None, :, None]


if __name__ == "__main__":
    key = jax.random.PRNGKey(0)
    kx, kw, kb = jax.random.split(key, 3)
    B, C, L = 2, 32, 16   # dim = 32 channels, sequence length 16 -> output length 32

    x = jax.random.normal(kx, (B, C, L), dtype=jnp.float32)
    bound = 1.0 / math.sqrt(C * 4)
    weight = jax.random.uniform(kw, (C, C, 4), dtype=jnp.float32, minval=-bound, maxval=bound)
    bias = jax.random.uniform(kb, (C,), dtype=jnp.float32, minval=-bound, maxval=bound)

    out = jax.jit(upsample1d)(x, weight, bias)
    jax.block_until_ready(out)

    ref = _reference(x, weight, bias)
    assert out.shape == (B, C, 2 * L), out.shape
    max_err = float(jnp.max(jnp.abs(out - ref)))
    assert jnp.allclose(out, ref, atol=1e-4, rtol=1e-4), f"mismatch vs reference: {max_err}"

    print("KERNEL_OK")
</pallas_src>

<mosaic_0001>
module attributes {stable_mosaic.version = 11 : i64} {
  func.func @_upsample1d_kernel(%arg0: i32, %arg1: memref<1x32x16xf32, #tpu.memory_space<vmem>>, %arg2: memref<128x32xf32, #tpu.memory_space<vmem>>, %arg3: memref<4x16x32xf32, #tpu.memory_space<vmem>>, %arg4: memref<32x1xf32, #tpu.memory_space<vmem>>, %arg5: memref<1x32x32xf32, #tpu.memory_space<vmem>>) attributes {dimension_semantics = [#tpu.dimension_semantics<parallel>], iteration_bounds = array<i64: 2>, scalar_prefetch = 0 : i64, scratch_operands = 0 : i64, tpu.core_type = #tpu.core_type<tc>, window_params = [{transform_indices = @transform_0, window_bounds = array<i64: 1, 32, 16>}, {pipeline_mode = #tpu.pipeline_mode<synchronous>, transform_indices = @transform_1, window_bounds = array<i64: 128, 32>}, {pipeline_mode = #tpu.pipeline_mode<synchronous>, transform_indices = @transform_2, window_bounds = array<i64: 4, 16, 32>}, {pipeline_mode = #tpu.pipeline_mode<synchronous>, transform_indices = @transform_3, window_bounds = array<i64: 32, 1>}, {transform_indices = @transform_4, window_bounds = array<i64: 1, 32, 32>}]} {
    %c0 = arith.constant 0 : index
    %c0_0 = arith.constant 0 : index
    %c0_1 = arith.constant 0 : index
    %0 = vector.load %arg1[%c0, %c0_0, %c0_1] : memref<1x32x16xf32, #tpu.memory_space<vmem>>, vector<1x32x16xf32>
    %1 = vector.shape_cast %0 : vector<1x32x16xf32> to vector<32x16xf32>
    %c0_2 = arith.constant 0 : index
    %c0_3 = arith.constant 0 : index
    %2 = vector.load %arg2[%c0_2, %c0_3] : memref<128x32xf32, #tpu.memory_space<vmem>>, vector<128x32xf32>
    %cst = arith.constant dense<0.000000e+00> : vector<128x16xf32>
    %3 = tpu.matmul %2, %1, %cst {dimension_numbers = #tpu.dot_dimension_numbers<[1], [0], [0], [1], [0, 0, 1, 1], [], []>, precision = #tpu.contract_precision<fp32>} : vector<128x32xf32>, vector<32x16xf32>, vector<128x16xf32> -> vector<128x16xf32>
    %4 = vector.extract_strided_slice %3 {offsets = [0, 0], sizes = [32, 16], strides = [1, 1]} : vector<128x16xf32> to vector<32x16xf32>
    %c0_4 = arith.constant 0 : index
    %c0_5 = arith.constant 0 : index
    %c0_6 = arith.constant 0 : index
    %5 = vector.load %arg3[%c0_4, %c0_5, %c0_6] : memref<4x16x32xf32, #tpu.memory_space<vmem>>, vector<1x16x32xf32>
    %6 = vector.shape_cast %5 : vector<1x16x32xf32> to vector<16x32xf32>
    %cst_7 = arith.constant dense<0.000000e+00> : vector<32x32xf32>
    %7 = tpu.matmul %4, %6, %cst_7 {dimension_numbers = #tpu.dot_dimension_numbers<[1], [0], [0], [1], [0, 0, 1, 1], [], []>, precision = #tpu.contract_precision<fp32>} : vector<32x16xf32>, vector<16x32xf32>, vector<32x32xf32> -> vector<32x32xf32>
    %8 = vector.extract_strided_slice %3 {offsets = [32, 0], sizes = [32, 16], strides = [1, 1]} : vector<128x16xf32> to vector<32x16xf32>
    %c1 = arith.constant 1 : index
    %c0_8 = arith.constant 0 : index
    %c0_9 = arith.constant 0 : index
    %9 = vector.load %arg3[%c1, %c0_8, %c0_9] : memref<4x16x32xf32, #tpu.memory_space<vmem>>, vector<1x16x32xf32>
    %10 = vector.shape_cast %9 : vector<1x16x32xf32> to vector<16x32xf32>
    %cst_10 = arith.constant dense<0.000000e+00> : vector<32x32xf32>
    %11 = tpu.matmul %8, %10, %cst_10 {dimension_numbers = #tpu.dot_dimension_numbers<[1], [0], [0], [1], [0, 0, 1, 1], [], []>, precision = #tpu.contract_precision<fp32>} : vector<32x16xf32>, vector<16x32xf32>, vector<32x32xf32> -> vector<32x32xf32>
    %12 = arith.addf %7, %11 : vector<32x32xf32>
    %13 = vector.extract_strided_slice %3 {offsets = [64, 0], sizes = [32, 16], strides = [1, 1]} : vector<128x16xf32> to vector<32x16xf32>
    %c2 = arith.constant 2 : index
    %c0_11 = arith.constant 0 : index
    %c0_12 = arith.constant 0 : index
    %14 = vector.load %arg3[%c2, %c0_11, %c0_12] : memref<4x16x32xf32, #tpu.memory_space<vmem>>, vector<1x16x32xf32>
    %15 = vector.shape_cast %14 : vector<1x16x32xf32> to vector<16x32xf32>
    %cst_13 = arith.constant dense<0.000000e+00> : vector<32x32xf32>
    %16 = tpu.matmul %13, %15, %cst_13 {dimension_numbers = #tpu.dot_dimension_numbers<[1], [0], [0], [1], [0, 0, 1, 1], [], []>, precision = #tpu.contract_precision<fp32>} : vector<32x16xf32>, vector<16x32xf32>, vector<32x32xf32> -> vector<32x32xf32>
    %17 = arith.addf %12, %16 : vector<32x32xf32>
    %18 = vector.extract_strided_slice %3 {offsets = [96, 0], sizes = [32, 16], strides = [1, 1]} : vector<128x16xf32> to vector<32x16xf32>
    %c3 = arith.constant 3 : index
    %c0_14 = arith.constant 0 : index
    %c0_15 = arith.constant 0 : index
    %19 = vector.load %arg3[%c3, %c0_14, %c0_15] : memref<4x16x32xf32, #tpu.memory_space<vmem>>, vector<1x16x32xf32>
    %20 = vector.shape_cast %19 : vector<1x16x32xf32> to vector<16x32xf32>
    %cst_16 = arith.constant dense<0.000000e+00> : vector<32x32xf32>
    %21 = tpu.matmul %18, %20, %cst_16 {dimension_numbers = #tpu.dot_dimension_numbers<[1], [0], [0], [1], [0, 0, 1, 1], [], []>, precision = #tpu.contract_precision<fp32>} : vector<32x16xf32>, vector<16x32xf32>, vector<32x32xf32> -> vector<32x32xf32>
    %22 = arith.addf %17, %21 : vector<32x32xf32>
    %c0_17 = arith.constant 0 : index
    %c0_18 = arith.constant 0 : index
    %23 = vector.load %arg4[%c0_17, %c0_18] : memref<32x1xf32, #tpu.memory_space<vmem>>, vector<32x1xf32>
    %24 = vector.broadcast %23 : vector<32x1xf32> to vector<32x32xf32>
    %25 = arith.addf %22, %24 : vector<32x32xf32>
    %c0_19 = arith.constant 0 : index
    %c0_20 = arith.constant 0 : index
    %c0_21 = arith.constant 0 : index
    %26 = vector.load %arg5[%c0_19, %c0_20, %c0_21] : memref<1x32x32xf32, #tpu.memory_space<vmem>>, vector<1x32x32xf32>
    %27 = vector.shape_cast %26 : vector<1x32x32xf32> to vector<32x32xf32>
    %28 = vector.shape_cast %25 : vector<32x32xf32> to vector<1x32x32xf32>
    tpu.vector_store %arg5[%c0_19, %c0_20, %c0_21], %28 {strides = array<i32>} : memref<1x32x32xf32, #tpu.memory_space<vmem>>, vector<1x32x32xf32>,
    return
  }
  func.func @transform_0(%arg0: i32) -> (i32, i32, i32) {
    %c0_i32 = arith.constant 0 : i32
    %c0_i32_0 = arith.constant 0 : i32
    %c0_i32_1 = arith.constant 0 : i32
    return %arg0, %c0_i32, %c0_i32_0 : i32, i32, i32
  }
  func.func @transform_1(%arg0: i32) -> (i32, i32) {
    %c0_i32 = arith.constant 0 : i32
    %c0_i32_0 = arith.constant 0 : i32
    %c0_i32_1 = arith.constant 0 : i32
    return %c0_i32, %c0_i32_0 : i32, i32
  }
  func.func @transform_2(%arg0: i32) -> (i32, i32, i32) {
    %c0_i32 = arith.constant 0 : i32
    %c0_i32_0 = arith.constant 0 : i32
    %c0_i32_1 = arith.constant 0 : i32
    %c0_i32_2 = arith.constant 0 : i32
    return %c0_i32, %c0_i32_0, %c0_i32_1 : i32, i32, i32
  }
  func.func @transform_3(%arg0: i32) -> (i32, i32) {
    %c0_i32 = arith.constant 0 : i32
    %c0_i32_0 = arith.constant 0 : i32
    %c0_i32_1 = arith.constant 0 : i32
    return %c0_i32, %c0_i32_0 : i32, i32
  }
  func.func @transform_4(%arg0: i32) -> (i32, i32, i32) {
    %c0_i32 = arith.constant 0 : i32
    %c0_i32_0 = arith.constant 0 : i32
    %c0_i32_1 = arith.constant 0 : i32
    return %arg0, %c0_i32, %c0_i32_0 : i32, i32, i32
  }
}

</mosaic_0001>

<bundles_post_ra>
// kernel: upsample1d.1
= control target key start
LH: loop header
LB: loop body
LE: loop exit
PB: predicated region body
PF: predicated region fallthrough
CT: control target
= control target key end

     0   :  { %9 = vsyncpa [#allocation3], 0  ;;  %s5945_s0 = inlined_call_operand.vmem [shape: f32[2,32,16], index: 0, kind: input, shape index: {}]   ;;  %s5946_s1 = inlined_call_operand.vmem [shape: f32[128,32], index: 1, kind: input, shape index: {}]   ;;  %s5947_s2 = inlined_call_operand.vmem [shape: f32[4,16,32], index: 2, kind: input, shape index: {}]   ;;  %s5948_s3 = inlined_call_operand.vmem [shape: f32[32,1], index: 3, kind: input, shape index: {}]   ;;  %s5949_s4 = inlined_call_operand.hbm [shape: f32[2,32,32], index: 4, kind: output, shape index: {}]  }
   0x1   :  { %11 = vsyncpa [#allocation3 + $0x1], 0  ;;  %s4774_s15 = smov 0   ;;  %s4776_s16 = smov 0  }
   0x2   :  { %s4778_s17 = smov 0   ;;  %s4780_s18 = smov 0  }
   0x3 LB: > { %s4795_s19 = sadd.s32 4294967295, %s4743_s18   ;;  %s3923_s20 = sadd.s32 4294967294, %s4743_s18   ;;  %s4743_s18 = sphi %s4780_s18, %s5983_s18   ;;  %s4739_s17 = sphi %s4778_s17, %s5982_s17   ;;  %s4735_s16 = sphi %s4776_s16, %s5981_s16   ;;  %s4731_s15 = sphi %s4774_s15, %s5980_s15  }
   0x4   : > { %s4799_s21 = sadd.s32 1, %s4743_s18   ;;  %s113_s22 = sadd.s32 1, %s4739_s17 }
   0x5   : > { %s110_s23 = ssub.s32 %s4743_s18, %s4799_s21  ;;  %p123_p0 = scmp.ne.s32.totalorder %s4739_s17, %s4735_s16 }
   0x6   : > { %p111_p1 = scmp.eq.s32.totalorder %s110_s23, 0  ;;  %p124_p2 = scmp.eq.s32.totalorder %s4795_s19, 1 }
   0x7   : > { %p129_p3 = scmp.ne.s32.totalorder %s4735_s16, %s4731_s15  ;;  %p130_p4 = scmp.eq.s32.totalorder %s3923_s20, 1 }
   0x8   : > { %s4810_s24 = scalar_select %p111_p1, %s4739_s17, %s113_s22  }
   0x9   : > { %p4812_p5 = por %p124_p2, %p123_p0  ;;  %p4816_p6 = por %p130_p4, %p129_p3 }
   0xa   : > { %p3926_p7 = scmp.ge.s32.totalorder %s4743_s18, 1  ;;  %p165_p8 = scmp.lt.s32.totalorder %s4743_s18, 3 }
   0xc   : > { %p166_p9 = pnand %p3926_p7, %p165_p8 }
   0xe   : > { %169 = sbr.rel (%p166_p9) target bundleno = 634 (0x27a), region = 36 }
  0x13   : > { %p191_p10 = scmp.lt.s32.totalorder %s4795_s19, 1  ;;  %v200_v0 = vld [vmem:[%s5946_s1] sm:$0xff]  ;;  %vm216_vm0 = vcmask 261120   ;;  %v201_v1 = vld [vmem:[%s5946_s1 + $0x8] sm:$0xff]  ;;  %v202_v2 = vld [vmem:[%s5946_s1 + $0x10] sm:$0xff]  ;;  %vm1400_vm1 = vcmask 130048  }
  0x14   : > { %v218_v3 = vsel %vm216_vm0, %v200_v0, 0  ;;  %v221_v4 = vsel %vm216_vm0, %v201_v1, 0  ;;  %v224_v5 = vsel %vm216_vm0, %v202_v2, 0  ;;  %v203_v6 = vld [vmem:[%s5946_s1 + $0x18] sm:$0xff]  ;;  %v204_v7 = vld [vmem:[%s5946_s1 + $0x20] sm:$0xff]  ;;  %v205_v8 = vld [vmem:[%s5946_s1 + $0x28] sm:$0xff] }
  0x15   : > { %s192_s13 = scalar_select %p191_p10, %s4795_s19, 1  ;;  %v4845_v9 = vand.u32 4294901760, %v218_v3  ;;  %v4847_v10 = vand.u32 4294901760, %v221_v4  ;;  %v4849_v11 = vand.u32 4294901760, %v224_v5  ;;  %v227_v12 = vsel %vm216_vm0, %v203_v6, 0  ;;  %v206_v13 = vld [vmem:[%s5946_s1 + $0x30] sm:$0xff] }
  0x16   : > { %v4855_v14 = vand.u32 4294901760, %v227_v12  ;;  %v230_v15 = vsel %vm216_vm0, %v204_v7, 0  ;;  %v233_v16 = vsel %vm216_vm0, %v205_v8, 0  ;;  %v236_v17 = vsel %vm216_vm0, %v206_v13, 0  ;;  %v207_v25 = vld [vmem:[%s5946_s1 + $0x38] sm:$0xff]  ;;  %v208_v2 = vld [vmem:[%s5946_s1 + $0x40] sm:$0xff] }
  0x17   : > { %s3941_s22 = sshll.u32 %s192_s13, 5  ;;  %v4861_v18 = vsub.f32 %v218_v3, %v4845_v9  ;;  %v4864_v19 = vsub.f32 %v221_v4, %v4847_v10  ;;  %v4867_v20 = vsub.f32 %v224_v5, %v4849_v11  ;;  %v4869_v21 = vand.u32 4294901760, %v230_v15  ;;  %4247 = vmatprep.mubr.f32.mxu1 %v4845_v9  ;;  %v209_v3 = vld [vmem:[%s5946_s1 + $0x48] sm:$0xff]  ;;  %v210_v4 = vld [vmem:[%s5946_s1 + $0x50] sm:$0xff]  ;;  %s188_s11 = sand.u32 1, %s4735_s16  }
  0x18   : > { %s195_s28 = scalar_lea.vmem %s5945_s0, %s3941_s22  ;;  %v4876_v22 = vsub.f32 %v227_v12, %v4855_v14  ;;  %v4878_v23 = vand.u32 4294901760, %v233_v16  ;;  %v4880_v24 = vand.u32 4294901760, %v236_v17  ;;  %v239_v45 = vsel %vm216_vm0, %v207_v25, 0  ;;  %v212_v25 = vld [vmem:[%s5946_s1 + $0x60] sm:$0xff]  ;;  %s3927_s12 = sshll.u32 %s188_s11, 5 }
  0x19   : > { %v199_v26 = vld [vmem:[%s195_s28 + $0x18] sm:$0xff]  ;;  %v198_v27 = vld [vmem:[%s195_s28 + $0x10] sm:$0xff]  ;;  %v197_v28 = vld [vmem:[%s195_s28 + $0x8] sm:$0xff]  ;;  %v336_v29 = vand.u32 4294901760, %v4861_v18  ;;  %v346_v30 = vand.u32 4294901760, %v4864_v19  ;;  %v356_v31 = vand.u32 4294901760, %v4867_v20  ;;  %v4889_v32 = vsub.f32 %v230_v15, %v4869_v21 }
  0x1a   : > { %v4891_v33 = vand.u32 4294901760, %v199_v26  ;;  %v4893_v34 = vand.u32 4294901760, %v198_v27  ;;  %v4895_v35 = vand.u32 4294901760, %v197_v28  ;;  %v196_v36 = vld [vmem:[%s195_s28] sm:$0xff]  ;;  %v366_v37 = vand.u32 4294901760, %v4876_v22  ;;  %s190_s13 = scalar_lea.vmem [#allocation2], %s3927_s12 }
  0x1b   : > { %v4898_v38 = vand.u32 4294901760, %v196_v36  ;;  %v337_v39 = vsub.f32 %v4861_v18, %v336_v29  ;;  %v347_v40 = vsub.f32 %v4864_v19, %v346_v30  ;;  %v357_v41 = vsub.f32 %v4867_v20, %v356_v31  ;;  %s3942_s14 = sshll.u32 %s4795_s19, 9  ;;  %s3861_s20 = sshll.u32 %s190_s13, 4  ;;  %s5899_s20 = int_to_ptr.vmem [resolvable:$true] %s3861_s20 }
  0x1c   : > { %4207 = vmatprep.subr.mxu0 %v4891_v33  ;;  %v4911_v42 = vsub.f32 %v199_v26, %v4891_v33  ;;  %v4914_v43 = vsub.f32 %v198_v27, %v4893_v34  ;;  %v4917_v44 = vsub.f32 %v197_v28, %v4895_v35  ;;  %v4924_v48 = vsub.f32 %v4876_v22, %v366_v37  ;;  %s5897_s27 = scalar_lea.hbm %s5949_s4, %s3942_s14  ;;  %s5905_s19 = scalar_lea.sflag [#allocation3], %s188_s11 }
  0x1d   : > { %4208 = vmatpush3.msra.mxu0 %v4891_v33  ;;  %v338_v46 = vand.u32 4294901760, %v337_v39  ;;  %v348_v47 = vand.u32 4294901760, %v347_v40  ;;  %v4927_v49 = vsub.f32 %v196_v36, %v4898_v38  ;;  %v358_v52 = vand.u32 4294901760, %v357_v41  ;;  %s4683_s28 = scalar_lea.vmem %s5899_s20, 512  ;;  %s4746_s29 = smov [#allocation2]  }
  0x1e   : > { %4209 = vmatprep.subr.mxu0 %v4893_v34  ;;  %v4931_v50 = vand.u32 4294901760, %v4911_v42  ;;  %v4934_v51 = vand.u32 4294901760, %v4914_v43  ;;  %v4937_v53 = vand.u32 4294901760, %v4917_v44  ;;  %v376_v55 = vand.u32 4294901760, %v4889_v32  ;;  %p4684_p11 = scmp.ne.s32.totalorder %s5899_s20, %s4683_s28  ;;  %s4687_s30 = sshll.u32 %s4746_s29, 4  ;;  %s4688_s30 = int_to_ptr.vmem [resolvable:$false] %s4687_s30 }
  0x1f   : > { %4210 = vmatpush3.msra.mxu0 %v4893_v34  ;;  %4215 = vmatprep.mubr.f32.mxu0 %v338_v46  ;;  %v4941_v54 = vand.u32 4294901760, %v4927_v49  ;;  %v4945_v56 = vsub.f32 %v233_v16, %v4878_v23  ;;  %v4948_v57 = vsub.f32 %v236_v17, %v4880_v24  ;;  %v4957_v61 = vand.u32 4294901760, %v239_v45  ;;  %v211_v17 = vld [vmem:[%s5946_s1 + $0x58] sm:$0xff]  ;;  %v213_v46 = vld [vmem:[%s5946_s1 + $0x68] sm:$0xff]  ;;  %s4689_s5 = scalar_lea.vmem %s4688_s30, 1024  ;;  %p4690_p0 = scmp.lt.s32.totalorder %s5899_s20, %s4688_s30 }
  0x20   : > { %4211 = vmatprep.subr.mxu0 %v4895_v35  ;;  %v522_v58 = vsub.f32 %v4911_v42, %v4931_v50  ;;  %v529_v59 = vsub.f32 %v4914_v43, %v4934_v51  ;;  %v536_v60 = vsub.f32 %v4917_v44, %v4937_v53  ;;  %v377_v63 = vsub.f32 %v4889_v32, %v376_v55  ;;  %p4685_p12 = pnand %p4684_p11, %p4812_p5  ;;  %p4691_p1 = scmp.lt.s32.totalorder %s4689_s5, %s4683_s28 }
  0x21   : > { %4212 = vmatpush3.msra.mxu0 %v4895_v35  ;;  %v543_v62 = vsub.f32 %v4927_v49, %v4941_v54  ;;  %v386_v0 = vand.u32 4294901760, %v4945_v56  ;;  %v396_v1 = vand.u32 4294901760, %v4948_v57  ;;  %v368_v7 = vand.u32 4294901760, %v4924_v48 }
  0x22   : > { %4213 = vmatprep.subr.mxu0 %v4898_v38  ;;  %v523_v5 = vand.u32 4294901760, %v522_v58  ;;  %v530_v6 = vand.u32 4294901760, %v529_v59  ;;  %v4979_v8 = vsub.f32 %v239_v45, %v4957_v61  ;;  %v537_v12 = vand.u32 4294901760, %v536_v60  ;;  %p4686_p13 = pneg %p4685_p12  ;;  %p4692_p2 = por %p4691_p1, %p4690_p0 }
  0x23   : > { %4214 = vmatpush3.msra.mxu0 %v4898_v38  ;;  %v544_v13 = vand.u32 4294901760, %v543_v62  ;;  %v387_v15 = vsub.f32 %v4945_v56, %v386_v0  ;;  %v397_v16 = vsub.f32 %v4948_v57, %v396_v1  ;;  %v242_v27 = vsel %vm216_vm0, %v208_v2, 0 }
  0x24   : > { %4216 = vmatmul.mubr.f32.vlgmr.msra.gmra.mxu0 %v348_v47  ;;  %4239 = vmatprep.subr.mxu1 %v523_v5  ;;  %v406_v26 = vand.u32 4294901760, %v4979_v8  ;;  %v245_v28 = vsel %vm216_vm0, %v209_v3, 0  ;;  %v248_v36 = vsel %vm216_vm0, %v210_v4, 0  ;;  %v378_v39 = vand.u32 4294901760, %v377_v63  ;;  %v214_v47 = vld [vmem:[%s5946_s1 + $0x70] sm:$0xff]  ;;  %v215_v3 = vld [vmem:[%s5946_s1 + $0x78] sm:$0xff]  ;;  %p4693_p3 = pnand %p4692_p2, %p4686_p13 }
  0x25   : > { %4240 = vmatpush3.msra.mxu1 %v523_v5  ;;  %4218 = vmatprep.mubr.f32.mxu0 %v358_v52  ;;  %v388_v40 = vand.u32 4294901760, %v387_v15  ;;  %v4998_v41 = vand.u32 4294901760, %v242_v27  ;;  %v5000_v45 = vand.u32 4294901760, %v245_v28  ;;  %v5012_v52 = vand.u32 4294901760, %v248_v36 }
  0x26   : > { %4241 = vmatprep.subr.mxu1 %v530_v6  ;;  %4271 = vmatprep.subr.mxu0 %v4911_v42  ;;  %v407_v48 = vsub.f32 %v4979_v8, %v406_v26  ;;  %v251_v58 = vsel %vm216_vm0, %v211_v17, 0  ;;  %v254_v59 = vsel %vm216_vm0, %v212_v25, 0  ;;  %v398_v4 = vand.u32 4294901760, %v397_v16 }
  0x27   : > { %4242 = vmatpush3.msra.mxu1 %v530_v6  ;;  %4272 = vmatpush3.msra.mxu0 %v4911_v42  ;;  %v5018_v60 = vsub.f32 %v242_v27, %v4998_v41  ;;  %v5021_v62 = vsub.f32 %v245_v28, %v5000_v45  ;;  %v5023_v63 = vand.u32 4294901760, %v251_v58  ;;  %v5025_v2 = vand.u32 4294901760, %v254_v59 }
  0x28   : > { %4219 = vmatmul.mubr.f32.gmra.mxu0 %v368_v7  ;;  %4243 = vmatprep.subr.mxu1 %v537_v12  ;;  %v5031_v5 = vsub.f32 %v248_v36, %v5012_v52  ;;  %v257_v42 = vsel %vm216_vm0, %v213_v46, 0  ;;  %v260_v6 = vsel %vm216_vm0, %v214_v47, 0  ;;  %v408_v36 = vand.u32 4294901760, %v407_v48 }
  0x29   : > { %4244 = vmatpush3.msra.mxu1 %v537_v12  ;;  %4221 = vmatprep.mubr.f32.mxu0 %v378_v39  ;;  %v416_v15 = vand.u32 4294901760, %v5018_v60  ;;  %v426_v17 = vand.u32 4294901760, %v5021_v62  ;;  %v5038_v25 = vsub.f32 %v251_v58, %v5023_v63  ;;  %v5041_v7 = vsub.f32 %v254_v59, %v5025_v2 }
  0x2a   : > { %4245 = vmatprep.subr.mxu1 %v544_v13  ;;  %4273 = vmatprep.subr.mxu0 %v4914_v43  ;;  %v5950_v16 = vand.u32 4294901760, %v5031_v5  ;;  %v5045_v27 = vand.u32 4294901760, %v257_v42  ;;  %v5047_v28 = vand.u32 4294901760, %v260_v6  ;;  %v263_v12 = vsel %vm216_vm0, %v215_v3, 0 }
  0x2b   : > { %4246 = vmatpush3.msra.mxu1 %v544_v13  ;;  %v417_v39 = vsub.f32 %v5018_v60, %v416_v15  ;;  %4274 = vmatpush3.msra.mxu0 %v4914_v43  ;;  %v427_v46 = vsub.f32 %v5021_v62, %v426_v17  ;;  %v446_v47 = vand.u32 4294901760, %v5038_v25  ;;  %v5062_v13 = vand.u32 4294901760, %v263_v12 }
  0x2c   : > { %4222 = vmatmul.mubr.f32.gmra.mxu0 %v388_v40  ;;  %4248 = vmatmul.mubr.f32.vlgmr.msra.gmra.mxu1 %v4847_v10  ;;  %v5060_v58 = vsub.f32 %v257_v42, %v5045_v27  ;;  %v437_v43 = vsub.f32 %v5031_v5, %v5950_v16  ;;  %v456_v40 = vand.u32 4294901760, %v5041_v7  ;;  %v5070_v59 = vsub.f32 %v260_v6, %v5047_v28 }
  0x2d   : > { %4303 = vmatprep.subr.mxu1 %v4891_v33  ;;  %4224 = vmatprep.mubr.f32.mxu0 %v398_v4  ;;  %v418_v48 = vand.u32 4294901760, %v417_v39  ;;  %v428_v3 = vand.u32 4294901760, %v427_v46  ;;  %v447_v4 = vsub.f32 %v5038_v25, %v446_v47  ;;  %v5082_v6 = vsub.f32 %v263_v12, %v5062_v13 }
  0x2e   : > { %4304 = vmatpush3.msra.mxu1 %v4891_v33  ;;  %4250 = vmatprep.mubr.f32.mxu1 %v4849_v11  ;;  %v466_v42 = vand.u32 4294901760, %v5060_v58  ;;  %v438_v39 = vand.u32 4294901760, %v437_v43  ;;  %v476_v16 = vand.u32 4294901760, %v5070_v59 }
  0x2f   : > { %4305 = vmatprep.subr.mxu1 %v4893_v34  ;;  %4275 = vmatprep.subr.mxu0 %v4917_v44  ;;  %v448_v12 = vand.u32 4294901760, %v447_v4 }
  0x30   : > { %4225 = vmatmul.mubr.f32.gmra.mxu0 %v408_v36  ;;  %4251 = vmatmul.mubr.f32.gmra.mxu1 %v4855_v14  ;;  %v457_v36 = vsub.f32 %v5041_v7, %v456_v40  ;;  %v467_v46 = vsub.f32 %v5060_v58, %v466_v42 }
  0x31   : > { %4227 = vmatprep.mubr.f32.mxu0 %v418_v48  ;;  %4253 = vmatprep.mubr.f32.mxu1 %v4869_v21  ;;  %v486_v48 = vand.u32 4294901760, %v5082_v6 }
  0x32   : > { %4306 = vmatpush3.msra.mxu1 %v4893_v34  ;;  %4276 = vmatpush3.msra.mxu0 %v4917_v44  ;;  %v458_v43 = vand.u32 4294901760, %v457_v36  ;;  %v477_v44 = vsub.f32 %v5070_v59, %v476_v16 }
  0x33   : > { %4307 = vmatprep.subr.mxu1 %v4895_v35  ;;  %4277 = vmatprep.subr.mxu0 %v4927_v49  ;;  %v487_v4 = vsub.f32 %v5082_v6, %v486_v48 }
  0x34   : > { %4228 = vmatmul.mubr.f32.gmra.mxu0 %v428_v3  ;;  %4254 = vmatmul.mubr.f32.gmra.mxu1 %v4878_v23  ;;  %v468_v3 = vand.u32 4294901760, %v467_v46 }
  0x35   : > { %4230 = vmatprep.mubr.f32.mxu0 %v438_v39  ;;  %4256 = vmatprep.mubr.f32.mxu1 %v4880_v24  ;;  %v478_v39 = vand.u32 4294901760, %v477_v44 }
  0x36   : > { %4308 = vmatpush3.msra.mxu1 %v4895_v35  ;;  %4278 = vmatpush3.msra.mxu0 %v4927_v49  ;;  %v488_v49 = vand.u32 4294901760, %v487_v4 }
  0x37   : > { %4309 = vmatprep.subr.mxu1 %v4898_v38  ;;  %4335 = vmatprep.subr.mxu0 %v4931_v50 }
  0x38   : > { %4231 = vmatmul.mubr.f32.gmra.mxu0 %v448_v12  ;;  %4257 = vmatmul.mubr.f32.gmra.mxu1 %v4957_v61 }
  0x39   : > { %4233 = vmatprep.mubr.f32.mxu0 %v458_v43  ;;  %4259 = vmatprep.mubr.f32.mxu1 %v4998_v41 }
  0x3a   : > { %4310 = vmatpush3.msra.mxu1 %v4898_v38 }
  0x3b   : > { %4367 = vmatprep.subr.mxu1 %v4891_v33 }
  0x3c   : > { %4234 = vmatmul.mubr.f32.gmra.mxu0 %v468_v3  ;;  %4260 = vmatmul.mubr.f32.gmra.mxu1 %v5000_v45 }
  0x3d   : > { %4236 = vmatprep.mubr.f32.mxu0 %v478_v39  ;;  %4262 = vmatprep.mubr.f32.mxu1 %v5012_v52 }
  0x40   : > { %4237 = vmatmul.mubr.f32.gmra.mxu0 %v488_v49  ;;  %4263 = vmatmul.mubr.f32.gmra.mxu1 %v5023_v63 }
  0x41   : > { %4265 = vmatprep.mubr.f32.mxu1 %v5025_v2  ;;  %4279 = vmatprep.mubr.f32.mxu0 %v4861_v18  ;;  %v5953_v18 = vand.u32 4294901760, %v5031_v5 }
  0x44   : > { %4266 = vmatmul.mubr.f32.gmra.mxu1 %v5045_v27  ;;  %4280 = vmatmul.mubr.f32.vlgmr.msra.gmra.mxu0 %v4864_v19 }
  0x45   : > { %4268 = vmatprep.mubr.f32.mxu1 %v5047_v28  ;;  %4282 = vmatprep.mubr.f32.mxu0 %v4867_v20 }
  0x46   : > { %4336 = vmatpush3.msra.mxu0 %v4931_v50 }
  0x47   : > { %4337 = vmatprep.subr.mxu0 %v4934_v51 }
  0x48   : > { %4269 = vmatmul.mubr.f32.gmra.mxu1 %v5062_v13  ;;  %4283 = vmatmul.mubr.f32.gmra.mxu0 %v4876_v22 }
  0x49   : > { %4285 = vmatprep.mubr.f32.mxu0 %v4889_v32  ;;  %4311 = vmatprep.mubr.f32.mxu1 %v336_v29 }
  0x4a   : > { %4338 = vmatpush3.msra.mxu0 %v4934_v51 }
  0x4b   : > { %4339 = vmatprep.subr.mxu0 %v4937_v53 }
  0x4c   : > { %4286 = vmatmul.mubr.f32.gmra.mxu0 %v4945_v56  ;;  %4312 = vmatmul.mubr.f32.vlgmr.msra.gmra.mxu1 %v346_v30 }
  0x4d   : > { %4368 = vmatpush3.msra.mxu1 %v4891_v33  ;;  %4288 = vmatprep.mubr.f32.mxu0 %v4948_v57 }
  0x4e   : > { %4314 = vmatprep.mubr.f32.mxu1 %v356_v31  ;;  %4369 = vmatprep.subr.mxu1 %v4893_v34 }
  0x4f   : > { %4370 = vmatpush3.msra.mxu1 %v4893_v34  ;;  %4340 = vmatpush3.msra.mxu0 %v4937_v53 }
  0x50   : > { %4289 = vmatmul.mubr.f32.gmra.mxu0 %v4979_v8  ;;  %4315 = vmatmul.mubr.f32.gmra.mxu1 %v366_v37 }
  0x51   : > { %4291 = vmatprep.mubr.f32.mxu0 %v5018_v60  ;;  %4317 = vmatprep.mubr.f32.mxu1 %v376_v55 }
  0x52   : > { %4371 = vmatprep.subr.mxu1 %v4895_v35  ;;  %4341 = vmatprep.subr.mxu0 %v4941_v54 }
  0x53   : > { %4372 = vmatpush3.msra.mxu1 %v4895_v35  ;;  %4342 = vmatpush3.msra.mxu0 %v4941_v54 }
  0x54   : > { %4292 = vmatmul.mubr.f32.gmra.mxu0 %v5021_v62  ;;  %4318 = vmatmul.mubr.f32.gmra.mxu1 %v386_v0 }
  0x55   : > { %4294 = vmatprep.mubr.f32.mxu0 %v5031_v5  ;;  %4320 = vmatprep.mubr.f32.mxu1 %v396_v1 }
  0x56   : > { %4373 = vmatprep.subr.mxu1 %v4898_v38 }
  0x57   : > { %4374 = vmatpush3.msra.mxu1 %v4898_v38 }
  0x58   : > { %4295 = vmatmul.mubr.f32.gmra.mxu0 %v5038_v25  ;;  %4321 = vmatmul.mubr.f32.gmra.mxu1 %v406_v26 }
  0x59   : > { %4297 = vmatprep.mubr.f32.mxu0 %v5041_v7  ;;  %4323 = vmatprep.mubr.f32.mxu1 %v416_v15 }
  0x5c   : > { %4298 = vmatmul.mubr.f32.gmra.mxu0 %v5060_v58  ;;  %4324 = vmatmul.mubr.f32.gmra.mxu1 %v426_v17 }
  0x5d   : > { %4300 = vmatprep.mubr.f32.mxu0 %v5070_v59  ;;  %4326 = vmatprep.mubr.f32.mxu1 %v5953_v18 }
  0x60   : > { %4301 = vmatmul.mubr.f32.gmra.mxu0 %v5082_v6  ;;  %4327 = vmatmul.mubr.f32.gmra.mxu1 %v446_v47 }
  0x61   : > { %4329 = vmatprep.mubr.f32.mxu1 %v456_v40  ;;  %4343 = vmatprep.mubr.f32.mxu0 %v4845_v9 }
  0x64   : > { %4330 = vmatmul.mubr.f32.gmra.mxu1 %v466_v42  ;;  %4344 = vmatmul.mubr.f32.vlgmr.msra.gmra.mxu0 %v4847_v10 }
  0x65   : > { %4332 = vmatprep.mubr.f32.mxu1 %v476_v16  ;;  %4346 = vmatprep.mubr.f32.mxu0 %v4849_v11 }
  0x68   : > { %4333 = vmatmul.mubr.f32.gmra.mxu1 %v486_v48  ;;  %4347 = vmatmul.mubr.f32.gmra.mxu0 %v4855_v14 }
  0x69   : > { %4349 = vmatprep.mubr.f32.mxu0 %v4869_v21  ;;  %4375 = vmatprep.mubr.f32.mxu1 %v4845_v9  ;;  %v3931_v9 = vld [vmem:[%s5947_s2 + $0x18] sm:$0xff] }
  0x6c   : > { %4350 = vmatmul.mubr.f32.gmra.mxu0 %v4878_v23  ;;  %4376 = vmatmul.mubr.f32.vlgmr.msra.gmra.mxu1 %v4847_v10  ;;  %v5217_v10 = vand.u32 4294901760, %v3931_v9 }
  0x6d   : > { %4352 = vmatprep.mubr.f32.mxu0 %v4880_v24  ;;  %4378 = vmatprep.mubr.f32.mxu1 %v4849_v11 }
  0x6e   : > { %4399 = vmatprep.subr.mxu0 %v5217_v10  ;;  %v5221_v11 = vsub.f32 %v3931_v9, %v5217_v10 }
  0x6f   : > { %4400 = vmatpush3.msra.mxu0 %v5217_v10 }
  0x70   : > { %4353 = vmatmul.mubr.f32.gmra.mxu0 %v4957_v61  ;;  %4379 = vmatmul.mubr.f32.gmra.mxu1 %v4855_v14  ;;  %v5225_v14 = vand.u32 4294901760, %v5221_v11 }
  0x71   : > { %4355 = vmatprep.mubr.f32.mxu0 %v4998_v41  ;;  %4381 = vmatprep.mubr.f32.mxu1 %v4869_v21  ;;  %v3930_v21 = vld [vmem:[%s5947_s2 + $0x10] sm:$0xff] }
  0x72   : > { %v1552_v19 = vsub.f32 %v5221_v11, %v5225_v14  ;;  %v5232_v22 = vand.u32 4294901760, %v3930_v21 }
  0x74   : > { %4356 = vmatmul.mubr.f32.gmra.mxu0 %v5000_v45  ;;  %4382 = vmatmul.mubr.f32.gmra.mxu1 %v4878_v23  ;;  %v1553_v20 = vand.u32 4294901760, %v1552_v19  ;;  %v5236_v23 = vsub.f32 %v3930_v21, %v5232_v22 }
  0x75   : > { %4358 = vmatprep.mubr.f32.mxu0 %v5012_v52  ;;  %4384 = vmatprep.mubr.f32.mxu1 %v4880_v24 }
  0x76   : > { %4409 = vmatprep.subr.mxu1 %v1553_v20  ;;  %4401 = vmatprep.subr.mxu0 %v5232_v22  ;;  %v5240_v24 = vand.u32 4294901760, %v5236_v23 }
  0x77   : > { %4410 = vmatpush3.msra.mxu1 %v1553_v20  ;;  %4402 = vmatpush3.msra.mxu0 %v5232_v22 }
  0x78   : > { %4359 = vmatmul.mubr.f32.gmra.mxu0 %v5023_v63  ;;  %4385 = vmatmul.mubr.f32.gmra.mxu1 %v4957_v61  ;;  %v1559_v29 = vsub.f32 %v5236_v23, %v5240_v24 }
  0x79   : > { %4361 = vmatprep.mubr.f32.mxu0 %v5025_v2  ;;  %4387 = vmatprep.mubr.f32.mxu1 %v4998_v41 }
  0x7a   : > { %4419 = vmatprep.subr.mxu0 %v5221_v11  ;;  %v1560_v30 = vand.u32 4294901760, %v1559_v29 }
  0x7c   : > { %4362 = vmatmul.mubr.f32.gmra.mxu0 %v5045_v27  ;;  %4388 = vmatmul.mubr.f32.gmra.mxu1 %v5000_v45 }
  0x7d   : > { %4364 = vmatprep.mubr.f32.mxu0 %v5047_v28  ;;  %4390 = vmatprep.mubr.f32.mxu1 %v5012_v52 }
  0x7e   : > { %4411 = vmatprep.subr.mxu1 %v1560_v30 }
  0x7f   : > { %4412 = vmatpush3.msra.mxu1 %v1560_v30 }
  0x80   : > { %4365 = vmatmul.mubr.f32.gmra.mxu0 %v5062_v13  ;;  %4391 = vmatmul.mubr.f32.gmra.mxu1 %v5023_v63 }
  0x81   : > { %4393 = vmatprep.mubr.f32.mxu1 %v5025_v2  ;;  %4429 = vmatprep.subr.mxu1 %v5217_v10 }
  0x84   : > { %4394 = vmatmul.mubr.f32.gmra.mxu1 %v5045_v27 }
  0x85   : > { %4396 = vmatprep.mubr.f32.mxu1 %v5047_v28 }
  0x88   : > { %4397 = vmatmul.mubr.f32.gmra.mxu1 %v5062_v13 }
  0xe4   : > { %v4217_v31 = vpop.f32.mrf.mxu0 }
  0xe6   : > { %v340_v32 = vpop.f32.mrf.mxu0 }
  0xe8   : > { %v4220_v33 = vpop.f32.mrf.mxu0 }
  0xea   : > { %v360_v34 = vpop.f32.mrf.mxu0 }
  0xec   : > { %v5246_v35 = vpop.f32.mrf.mxu0  ;;  %v4249_v37 = vpop.f32.mrf.mxu1 }
  0xed   : > { %v5248_v38 = vadd.f32 %v4249_v37, %v4217_v31 }
  0xee   : > { %v5250_v50 = vpop.f32.mrf.mxu0  ;;  %v581_v51 = vpop.f32.mrf.mxu1 }
  0xef   : > { %v5252_v53 = vadd.f32 %v581_v51, %v340_v32 }
  0xf0   : > { %v5254_v54 = vpop.f32.mrf.mxu0  ;;  %v4252_v55 = vpop.f32.mrf.mxu1 }
  0xf1   : > { %v5256_v56 = vadd.f32 %v4252_v55, %v4220_v33 }
  0xf2   : > { %v5258_v57 = vpop.f32.mrf.mxu0  ;;  %v593_v61 = vpop.f32.mrf.mxu1 }
  0xf3   : > { %v5260_v0 = vadd.f32 %v593_v61, %v360_v34 }
  0xf4   : > { %v4229_v1 = vpop.f32.mrf.mxu0  ;;  %v5262_v8 = vpop.f32.mrf.mxu1 }
  0xf6   : > { %v420_v26 = vpop.f32.mrf.mxu0  ;;  %v5264_v41 = vpop.f32.mrf.mxu1 }
  0xf8   : > { %v4232_v45 = vpop.f32.mrf.mxu0  ;;  %v5266_v52 = vpop.f32.mrf.mxu1 }
  0xfa   : > { %v440_v60 = vpop.f32.mrf.mxu0  ;;  %v5268_v62 = vpop.f32.mrf.mxu1 }
  0xfc   : > { %v4235_v63 = vpop.f32.mrf.mxu0  ;;  %v4261_v2 = vpop.f32.mrf.mxu1 }
  0xfd   : > { %v636_v5 = vadd.f32 %v4261_v2, %v4229_v1 }
  0xfe   : > { %v460_v15 = vpop.f32.mrf.mxu0  ;;  %v629_v17 = vpop.f32.mrf.mxu1 }
  0xff   : > { %v630_v25 = vadd.f32 %v629_v17, %v420_v26 }
 0x100   : > { %v4238_v7 = vpop.f32.mrf.mxu0  ;;  %v4264_v16 = vpop.f32.mrf.mxu1 }
 0x101   : > { %v648_v27 = vadd.f32 %v4264_v16, %v4232_v45 }
 0x102   : > { %v480_v28 = vpop.f32.mrf.mxu0  ;;  %v641_v47 = vpop.f32.mrf.mxu1 }
 0x103   : > { %v642_v58 = vadd.f32 %v641_v47, %v440_v60 }
 0x104   : > { %v4267_v13 = vpop.f32.mrf.mxu1  ;;  %v5270_v40 = vpop.f32.mrf.mxu0 }
 0x105   : > { %v660_v59 = vadd.f32 %v4267_v13, %v4235_v63 }
 0x106   : > { %v653_v42 = vpop.f32.mrf.mxu1  ;;  %v5272_v6 = vpop.f32.mrf.mxu0 }
 0x107   : > { %v654_v36 = vadd.f32 %v653_v42, %v460_v15  ;;  %v4745_v42 = vmov 0  }
 0x108   : > { %v4270_v12 = vpop.f32.mrf.mxu1  ;;  %v5274_v46 = vpop.f32.mrf.mxu0  ;;  %4681 = vset.pattern.permute.xlu0 %v4745_v42  ;;  %4682 = vset.pattern.permute.xlu1 %v4745_v42 }
 0x109   : > { %v672_v48 = vadd.f32 %v4270_v12, %v4238_v7 }
 0x10a   : > { %v665_v43 = vpop.f32.mrf.mxu1  ;;  %v5276_v44 = vpop.f32.mrf.mxu0 }
 0x10b   : > { %v666_v3 = vadd.f32 %v665_v43, %v480_v28 }
 0x10c   : > { %v5278_v4 = vpop.f32.mrf.mxu0  ;;  %v5280_v39 = vpop.f32.mrf.mxu1 }
 0x10e   : > { %v5282_v49 = vpop.f32.mrf.mxu0  ;;  %v5284_v18 = vpop.f32.mrf.mxu1 }
 0x110   : > { %v5286_v9 = vpop.f32.mrf.mxu0  ;;  %v5288_v19 = vpop.f32.mrf.mxu1 }
 0x112   : > { %v5290_v20 = vpop.f32.mrf.mxu0  ;;  %v5292_v21 = vpop.f32.mrf.mxu1 }
 0x114   : > { %v4293_v29 = vpop.f32.mrf.mxu0  ;;  %v4319_v30 = vpop.f32.mrf.mxu1 }
 0x115   : > { %v815_v31 = vadd.f32 %v4293_v29, %v636_v5  ;;  %v3816_v29 = vld [vmem:[%s5948_s3 + $0x8] sm:$0xff] }
 0x116   : > { %v807_v32 = vpop.f32.mrf.mxu0  ;;  %v5294_v33 = vpop.f32.mrf.mxu1 }
 0x117   : > { %v808_v34 = vadd.f32 %v807_v32, %v630_v25 }
 0x118   : > { %v4296_v37 = vpop.f32.mrf.mxu0  ;;  %v5296_v51 = vpop.f32.mrf.mxu1 }
 0x119   : > { %v829_v55 = vadd.f32 %v4296_v37, %v648_v27  ;;  %v3815_v27 = vld [vmem:[%s5948_s3] sm:$0xff] }
 0x11a   : > { %v821_v61 = vpop.f32.mrf.mxu0  ;;  %v5298_v1 = vpop.f32.mrf.mxu1  ;;  %3821 = vperm.xlu0 %4681, %v3815_v27   ;;  %v606_v27 = vadd.f32 %v5264_v41, %v5250_v50 }
 0x11b   : > { %v822_v26 = vadd.f32 %v821_v61, %v642_v58  ;;  %v3817_v58 = vld [vmem:[%s5948_s3 + $0x10] sm:$0xff] }
 0x11c   : > { %v4299_v45 = vpop.f32.mrf.mxu0  ;;  %v4325_v60 = vpop.f32.mrf.mxu1  ;;  %3831 = vperm.xlu1 %4682, %v3817_v58   ;;  %v780_v42 = vadd.f32 %v5282_v49, %v606_v27 }
 0x11d   : > { %v843_v63 = vadd.f32 %v4299_v45, %v660_v59  ;;  %v5300_v2 = vadd.f32 %v4325_v60, %v815_v31  ;;  %v3818_v31 = vld [vmem:[%s5948_s3 + $0x18] sm:$0xff] }
 0x11e   : > { %v835_v15 = vpop.f32.mrf.mxu0  ;;  %v997_v17 = vpop.f32.mrf.mxu1  ;;  %3826 = vperm.xlu0 %4681, %v3816_v29   ;;  %v966_v50 = vadd.f32 %v5294_v33, %v780_v42  ;;  %v1395_v42 = vld [vmem:[%s5947_s2] sm:$0xff] }
 0x11f   : > { %v836_v5 = vadd.f32 %v835_v15, %v654_v36  ;;  %v5302_v7 = vadd.f32 %v997_v17, %v808_v34 }
 0x120   : > { %v4302_v16 = vpop.f32.mrf.mxu0  ;;  %v4328_v25 = vpop.f32.mrf.mxu1  ;;  %3836 = vperm.xlu1 %4682, %v3818_v31  }
 0x121   : > { %v857_v28 = vadd.f32 %v4302_v16, %v672_v48  ;;  %v5304_v47 = vadd.f32 %v4328_v25, %v829_v55  ;;  %v612_v16 = vadd.f32 %v5262_v8, %v5246_v35  ;;  %v618_v35 = vadd.f32 %v5268_v62, %v5258_v57 }
 0x122   : > { %v849_v13 = vpop.f32.mrf.mxu0  ;;  %v1013_v59 = vpop.f32.mrf.mxu1 }
 0x123   : > { %v850_v36 = vadd.f32 %v849_v13, %v666_v3  ;;  %v5312_v12 = vadd.f32 %v1013_v59, %v822_v26  ;;  %v624_v59 = vadd.f32 %v5266_v52, %v5254_v54 }
 0x124   : > { %v4331_v48 = vpop.f32.mrf.mxu1  ;;  %v5314_v43 = vpop.f32.mrf.mxu0 }
 0x125   : > { %v5322_v32 = vadd.f32 %v4331_v48, %v843_v63  ;;  %v801_v8 = vadd.f32 %v5286_v9, %v624_v59 }
 0x126   : > { %v1029_v34 = vpop.f32.mrf.mxu1  ;;  %v5324_v37 = vpop.f32.mrf.mxu0 }
 0x127   : > { %v5326_v3 = vadd.f32 %v1029_v34, %v836_v5  ;;  %v794_v34 = vadd.f32 %v5290_v20, %v618_v35  ;;  %v990_v54 = vadd.f32 %v5296_v51, %v801_v8  ;;  %v1396_v20 = vld [vmem:[%s5947_s2 + $0x8] sm:$0xff] }
 0x128   : > { %v4334_v55 = vpop.f32.mrf.mxu1  ;;  %v5328_v61 = vpop.f32.mrf.mxu0  ;;  %v5385_v8 = vand.u32 4294901760, %v1396_v20 }
 0x129   : > { %v5330_v26 = vadd.f32 %v4334_v55, %v857_v28  ;;  %v787_v28 = vadd.f32 %v5278_v4, %v612_v16  ;;  %v982_v57 = vadd.f32 %v5298_v1, %v794_v34 }
 0x12a   : > { %v1045_v45 = vpop.f32.mrf.mxu1  ;;  %v5332_v60 = vpop.f32.mrf.mxu0 }
 0x12b   : > { %v5334_v15 = vadd.f32 %v1045_v45, %v850_v36  ;;  %v974_v36 = vadd.f32 %v4319_v30, %v787_v28 }
 0x12c   : > { %v4351_v17 = vpop.f32.mrf.mxu0  ;;  %v5336_v63 = vpop.f32.mrf.mxu1 }
 0x12d   : > { %v1167_v41 = vadd.f32 %v4351_v17, %v974_v36  ;;  %v752_v36 = vadd.f32 %v5272_v6, %v5252_v53  ;;  %v5399_v6 = vand.u32 4294901760, %v1395_v42 }
 0x12e   : > { %v1160_v5 = vpop.f32.mrf.mxu0  ;;  %v5340_v25 = vpop.f32.mrf.mxu1 }
 0x12f   : > { %v1161_v52 = vadd.f32 %v1160_v5, %v966_v50 }
 0x130   : > { %v4354_v58 = vpop.f32.mrf.mxu0  ;;  %v5345_v13 = vpop.f32.mrf.mxu1 }
 0x131   : > { %v1179_v62 = vadd.f32 %v4354_v58, %v990_v54 }
 0x132   : > { %v1172_v48 = vpop.f32.mrf.mxu0  ;;  %v5350_v29 = vpop.f32.mrf.mxu1 }
 0x133   : > { %v1173_v51 = vadd.f32 %v1172_v48, %v982_v57 }
 0x134   : > { %v5356_v4 = vpop.f32.mrf.mxu0  ;;  %v4383_v31 = vpop.f32.mrf.mxu1 }
 0x135   : > { %v1332_v49 = vadd.f32 %v4383_v31, %v1167_v41 }
 0x136   : > { %v5360_v30 = vpop.f32.mrf.mxu0  ;;  %v1325_v55 = vpop.f32.mrf.mxu1 }
 0x137   : > { %v1405_v9 = vsel %vm1400_vm1, %v1332_v49, 0  ;;  %v1326_v33 = vadd.f32 %v1325_v55, %v1161_v52  ;;  %v934_v52 = vadd.f32 %v5284_v18, %v752_v36  ;;  %v759_v49 = vadd.f32 %v5270_v40, %v5248_v38 }
 0x138   : > { %v5364_v45 = vand.u32 4294901760, %v1405_v9  ;;  %v5366_v17 = vpop.f32.mrf.mxu0  ;;  %v4386_v16 = vpop.f32.mrf.mxu1  ;;  %v5418_v38 = vsub.f32 %v1396_v20, %v5385_v8 }
 0x139   : > { %v1402_v5 = vsel %vm1400_vm1, %v1326_v33, 0  ;;  %v1344_v27 = vadd.f32 %v4386_v16, %v1179_v62  ;;  %v766_v33 = vadd.f32 %v5276_v44, %v5260_v0  ;;  %v1137_v16 = vadd.f32 %v5324_v37, %v934_v52 }
 0x13a   : > { %v5373_v28 = vsub.f32 %v1405_v9, %v5364_v45  ;;  %v5375_v1 = vand.u32 4294901760, %v1402_v5  ;;  %v5377_v58 = vpop.f32.mrf.mxu0  ;;  %v1337_v59 = vpop.f32.mrf.mxu1  ;;  %v942_v40 = vadd.f32 %v5280_v39, %v759_v49  ;;  %v5435_v39 = vsub.f32 %v1395_v42, %v5399_v6 }
 0x13b   : > { %v1411_v48 = vsel %vm1400_vm1, %v1344_v27, 0  ;;  %v1338_v35 = vadd.f32 %v1337_v59, %v1173_v51  ;;  %v950_v44 = vadd.f32 %v5292_v21, %v766_v33  ;;  %v1302_v37 = vadd.f32 %v5340_v25, %v1137_v16 }
 0x13c   : > { %v1492_v50 = vand.u32 4294901760, %v5373_v28  ;;  %v5389_v41 = vsub.f32 %v1402_v5, %v5375_v1  ;;  %v5391_v31 = vand.u32 4294901760, %v1411_v48  ;;  %v4363_v34 = vpop.f32.mrf.mxu0  ;;  %v5393_v54 = vpop.f32.mrf.mxu1  ;;  %4413 = vmatprep.mubr.f32.mxu1 %v5375_v1  ;;  %v773_v59 = vadd.f32 %v5274_v46, %v5256_v56 }
 0x13d   : > { %v1408_v53 = vsel %vm1400_vm1, %v1338_v35, 0  ;;  %4414 = vmatmul.mubr.f32.vlgmr.msra.gmra.mxu1 %v5364_v45  ;;  %v1143_v36 = vadd.f32 %v5314_v43, %v942_v40  ;;  %v1149_v52 = vadd.f32 %v5332_v60, %v950_v44  ;;  %v1215_v49 = vadd.f32 %v4363_v34, %v5322_v32 }
 0x13e   : > { %v5404_v55 = vsub.f32 %v1411_v48, %v5391_v31  ;;  %v5406_v57 = vand.u32 4294901760, %v1408_v53  ;;  %v1208_v62 = vpop.f32.mrf.mxu0  ;;  %v5408_v9 = vpop.f32.mrf.mxu1  ;;  %4430 = vmatpush3.msra.mxu1 %v5217_v10  ;;  %v1482_v18 = vand.u32 4294901760, %v5389_v41  ;;  %v1493_v51 = vsub.f32 %v5373_v28, %v1492_v50 }
 0x13f   : > { %4431 = vmatprep.subr.mxu1 %v5232_v22  ;;  %v958_v33 = vadd.f32 %v5288_v19, %v773_v59  ;;  %v1308_v56 = vadd.f32 %v5336_v63, %v1143_v36  ;;  %v2002_v16 = vsel %vm1400_vm1, %v1302_v37, 0  ;;  %v1314_v60 = vadd.f32 %v5350_v29, %v1149_v52 }
 0x140   : > { %v5422_v5 = vsub.f32 %v1408_v53, %v5406_v57  ;;  %v5424_v27 = vpop.f32.mrf.mxu1  ;;  %4416 = vmatprep.mubr.f32.mxu1 %v5406_v57  ;;  %v1483_v0 = vsub.f32 %v5389_v41, %v1482_v18  ;;  %4432 = vmatpush3.msra.mxu1 %v5232_v22  ;;  %v1512_v20 = vand.u32 4294901760, %v5404_v55  ;;  %v4366_v48 = vpop.f32.mrf.mxu0  ;;  %v1494_v53 = vand.u32 4294901760, %v1493_v51 }
 0x141   : > { %4417 = vmatmul.mubr.f32.gmra.mxu1 %v5391_v31  ;;  %4449 = vmatprep.subr.mxu1 %v5217_v10  ;;  %v1209_v51 = vadd.f32 %v1208_v62, %v5326_v3  ;;  %v1155_v19 = vadd.f32 %v5328_v61, %v958_v33  ;;  %v1227_v44 = vadd.f32 %v4366_v48, %v5330_v26  ;;  %v2005_v61 = vsel %vm1400_vm1, %v1308_v56, 0 }
 0x142   : > { %v5440_v35 = vpop.f32.mrf.mxu1  ;;  %4433 = vmatprep.mubr.f32.mxu1 %v1482_v18  ;;  %v1484_v21 = vand.u32 4294901760, %v1483_v0  ;;  %v1502_v25 = vand.u32 4294901760, %v5422_v5  ;;  %v1513_v42 = vsub.f32 %v5404_v55, %v1512_v20  ;;  %v5450_v18 = vand.u32 4294901760, %v5418_v38  ;;  %v1220_v34 = vpop.f32.mrf.mxu0 }
 0x143   : > { %v5458_v0 = vand.u32 4294901760, %v5435_v39  ;;  %v2008_v59 = vsel %vm1400_vm1, %v1314_v60, 0  ;;  %v1221_v36 = vadd.f32 %v1220_v34, %v5334_v15  ;;  %v1185_v60 = vadd.f32 %v5360_v30, %v5302_v7 }
 0x144   : > { %v4395_v46 = vpop.f32.mrf.mxu1  ;;  %4403 = vmatprep.mubr.f32.mxu0 %v1484_v21  ;;  %v1503_v43 = vsub.f32 %v5422_v5, %v1502_v25  ;;  %v1514_v62 = vand.u32 4294901760, %v1513_v42  ;;  %v2152_v26 = vsub.f32 %v5418_v38, %v5450_v18  ;;  %v5493_v52 = vand.u32 4294901760, %v2008_v59 }
 0x145   : > { %v1380_v32 = vadd.f32 %v4395_v46, %v1215_v49  ;;  %4404 = vmatmul.mubr.f32.vlgmr.msra.gmra.mxu0 %v1494_v53  ;;  %4434 = vmatmul.mubr.f32.vlgmr.msra.gmra.mxu1 %v1492_v50  ;;  %v5467_v50 = vand.u32 4294901760, %v2002_v16  ;;  %v2159_v15 = vsub.f32 %v5435_v39, %v5458_v0  ;;  %v1350_v7 = vadd.f32 %v5408_v9, %v1185_v60 }
 0x146   : > { %v1373_v63 = vpop.f32.mrf.mxu1  ;;  %4420 = vmatpush3.msra.mxu0 %v5221_v11  ;;  %4436 = vmatprep.mubr.f32.mxu1 %v1502_v25  ;;  %v1504_v40 = vand.u32 4294901760, %v1503_v43  ;;  %v1320_v11 = vadd.f32 %v5345_v13, %v1155_v19  ;;  %v5480_v13 = vand.u32 4294901760, %v2005_v61  ;;  %v2153_v53 = vand.u32 4294901760, %v2152_v26 }
 0x147   : > { %v5462_v29 = vsel %vm1400_vm1, %v1380_v32, 0  ;;  %v1374_v3 = vadd.f32 %v1373_v63, %v1209_v51  ;;  %4421 = vmatprep.subr.mxu0 %v5236_v23  ;;  %4450 = vmatpush3.msra.mxu1 %v5217_v10  ;;  %v5511_v56 = vsub.f32 %v2008_v59, %v5493_v52  ;;  %v1191_v30 = vadd.f32 %v5356_v4, %v5300_v2 }
 0x148   : > { %v4398_v37 = vpop.f32.mrf.mxu1  ;;  %4406 = vmatprep.mubr.f32.mxu0 %v1504_v40  ;;  %4422 = vmatpush3.msra.mxu0 %v5236_v23  ;;  %v5504_v42 = vsub.f32 %v2005_v61, %v5480_v13  ;;  %v1197_v63 = vadd.f32 %v5377_v58, %v5312_v12  ;;  %v2605_v12 = vsel %vm1400_vm1, %v1350_v7, 0 }
 0x149   : > { %v5476_v48 = vsel %vm1400_vm1, %v1374_v3, 0  ;;  %v1392_v10 = vadd.f32 %v4398_v37, %v1227_v44  ;;  %4407 = vmatmul.mubr.f32.gmra.mxu0 %v1514_v62  ;;  %4437 = vmatmul.mubr.f32.gmra.mxu1 %v1512_v20  ;;  %v5490_v20 = vsub.f32 %v2002_v16, %v5467_v50  ;;  %v1203_v44 = vadd.f32 %v5366_v17, %v5304_v47 }
 0x14a   : > { %v1385_v21 = vpop.f32.mrf.mxu1  ;;  %4423 = vmatprep.mubr.f32.mxu0 %v5389_v41  ;;  %4453 = vmatprep.mubr.f32.mxu1 %v5375_v1  ;;  %v2011_v41 = vsel %vm1400_vm1, %v1320_v11, 0  ;;  %v1362_v58 = vadd.f32 %v5440_v35, %v1197_v63  ;;  %v5581_v61 = vand.u32 4294901760, %v2605_v12 }
 0x14b   : > { %v5483_v23 = vsel %vm1400_vm1, %v1392_v10, 0  ;;  %v1386_v25 = vadd.f32 %v1385_v21, %v1221_v36  ;;  %4451 = vmatprep.subr.mxu1 %v5232_v22  ;;  %4439 = vmatprep.subr.mxu0 %v5225_v14  ;;  %v5506_v33 = vand.u32 4294901760, %v2011_v41  ;;  %v1368_v35 = vadd.f32 %v5424_v27, %v1203_v44 }
 0x14c   : > { %4452 = vmatpush3.msra.mxu1 %v5232_v22  ;;  %v2160_v22 = vand.u32 4294901760, %v2159_v15  ;;  %v2611_v17 = vsel %vm1400_vm1, %v1362_v58, 0 }
 0x14d   : > { %v5497_v49 = vsel %vm1400_vm1, %v1386_v25, 0  ;;  %4424 = vmatmul.mubr.f32.vlgmr.msra.gmra.mxu0 %v5373_v28  ;;  %4454 = vmatmul.mubr.f32.vlgmr.msra.gmra.mxu1 %v5364_v45  ;;  %v2082_v28 = vand.u32 4294901760, %v5490_v20  ;;  %v5523_v46 = vsub.f32 %v2011_v41, %v5506_v33  ;;  %v2614_v11 = vsel %vm1400_vm1, %v1368_v35, 0 }
 0x14e   : > { %4426 = vmatprep.mubr.f32.mxu0 %v5422_v5  ;;  %4440 = vmatpush3.msra.mxu0 %v5225_v14  ;;  %v3933_v14 = vld [vmem:[%s5947_s2 + $0x28] sm:$0xff]  ;;  %v2092_v5 = vand.u32 4294901760, %v5504_v42  ;;  %v5601_v37 = vand.u32 4294901760, %v2611_v17  ;;  %v5612_v59 = vand.u32 4294901760, %v2614_v11 }
 0x14f   : > { %4456 = vmatprep.mubr.f32.mxu1 %v5406_v57  ;;  %4441 = vmatprep.subr.mxu0 %v5240_v24  ;;  %v5529_v43 = vand.u32 4294901760, %v3933_v14  ;;  %v2112_v51 = vand.u32 4294901760, %v5523_v46 }
 0x150   : > { %4469 = vmatprep.subr.mxu1 %v2153_v53  ;;  %4442 = vmatpush3.msra.mxu0 %v5240_v24  ;;  %v2083_v24 = vsub.f32 %v5490_v20, %v2082_v28  ;;  %v2093_v16 = vsub.f32 %v5504_v42, %v2092_v5  ;;  %v5617_v36 = vsub.f32 %v2611_v17, %v5601_v37 }
 0x151   : > { %4427 = vmatmul.mubr.f32.gmra.mxu0 %v5404_v55  ;;  %4457 = vmatmul.mubr.f32.gmra.mxu1 %v5391_v31  ;;  %v2102_v55 = vand.u32 4294901760, %v5511_v56  ;;  %v5550_v19 = vsub.f32 %v3933_v14, %v5529_v43  ;;  %v2113_v40 = vsub.f32 %v5523_v46, %v2112_v51  ;;  %v5629_v25 = vsub.f32 %v2614_v11, %v5612_v59 }
 0x152   : > { %4443 = vmatprep.mubr.f32.mxu0 %v5375_v1  ;;  %4470 = vmatpush3.msra.mxu1 %v2153_v53  ;;  %v3932_v1 = vld [vmem:[%s5947_s2 + $0x20] sm:$0xff]  ;;  %v2094_v34 = vand.u32 4294901760, %v2093_v16  ;;  %v2705_v15 = vand.u32 4294901760, %v5617_v36  ;;  %v5684_v16 = vand.u32 4294901760, %v5462_v29 }
 0x153   : > { %4473 = vmatprep.mubr.f32.mxu1 %v5467_v50  ;;  %4471 = vmatprep.subr.mxu1 %v2160_v22  ;;  %v5544_v32 = vand.u32 4294901760, %v3932_v1  ;;  %v5569_v4 = vand.u32 4294901760, %v5550_v19  ;;  %v2715_v53 = vand.u32 4294901760, %v5629_v25 }
 0x154   : > { %4472 = vmatpush3.msra.mxu1 %v2160_v22  ;;  %4459 = vmatprep.subr.mxu0 %v5385_v8  ;;  %v2706_v22 = vsub.f32 %v5617_v36, %v2705_v15 }
 0x155   : > { %4444 = vmatmul.mubr.f32.vlgmr.msra.gmra.mxu0 %v5364_v45  ;;  %4474 = vmatmul.mubr.f32.vlgmr.msra.gmra.mxu1 %v5480_v13  ;;  %v2084_v45 = vand.u32 4294901760, %v2083_v24  ;;  %v5563_v9 = vsub.f32 %v3932_v1, %v5544_v32  ;;  %v2755_v47 = vsub.f32 %v5550_v19, %v5569_v4 }
 0x156   : > { %4446 = vmatprep.mubr.f32.mxu0 %v5406_v57  ;;  %4460 = vmatpush3.msra.mxu0 %v5385_v8  ;;  %v2103_v57 = vsub.f32 %v5511_v56, %v2102_v55 }
 0x157   : > { %4476 = vmatprep.mubr.f32.mxu1 %v5493_v52  ;;  %4461 = vmatprep.subr.mxu0 %v5399_v6  ;;  %v5578_v3 = vand.u32 4294901760, %v5563_v9 }
 0x158   : > { %4489 = vmatprep.subr.mxu1 %v5385_v8  ;;  %4462 = vmatpush3.msra.mxu0 %v5399_v6  ;;  %v2104_v2 = vand.u32 4294901760, %v2103_v57  ;;  %v5706_v57 = vand.u32 4294901760, %v5483_v23 }
 0x159   : > { %4447 = vmatmul.mubr.f32.gmra.mxu0 %v5391_v31  ;;  %4477 = vmatmul.mubr.f32.gmra.mxu1 %v5506_v33  ;;  %v1356_v31 = vadd.f32 %v5393_v54, %v1191_v30  ;;  %v2114_v54 = vand.u32 4294901760, %v2113_v40  ;;  %v2762_v27 = vsub.f32 %v5563_v9, %v5578_v3 }
 0x15a   : > { %4463 = vmatprep.mubr.f32.mxu0 %v2084_v45  ;;  %4490 = vmatpush3.msra.mxu1 %v5385_v8  ;;  %v5695_v45 = vand.u32 4294901760, %v5497_v49  ;;  %v3321_v30 = vsub.f32 %v5483_v23, %v5706_v57 }
 0x15b   : > { %4493 = vmatprep.mubr.f32.mxu1 %v2082_v28  ;;  %4491 = vmatprep.subr.mxu1 %v5399_v6  ;;  %v2608_v62 = vsel %vm1400_vm1, %v1356_v31, 0  ;;  %v2716_v28 = vsub.f32 %v5629_v25, %v2715_v53 }
 0x15c   : > { %4492 = vmatpush3.msra.mxu1 %v5399_v6  ;;  %4479 = vmatprep.subr.mxu0 %v5418_v38  ;;  %v3322_v23 = vand.u32 4294901760, %v3321_v30 }
 0x15d   : > { %4464 = vmatmul.mubr.f32.vlgmr.msra.gmra.mxu0 %v2094_v34  ;;  %4494 = vmatmul.mubr.f32.vlgmr.msra.gmra.mxu1 %v2092_v5  ;;  %v2707_v5 = vand.u32 4294901760, %v2706_v22 }
 0x15e   : > { %4466 = vmatprep.mubr.f32.mxu0 %v2104_v2  ;;  %4480 = vmatpush3.msra.mxu0 %v5418_v38  ;;  %v5591_v38 = vand.u32 4294901760, %v2608_v62  ;;  %v3323_v2 = vsub.f32 %v3321_v30, %v3322_v23 }
 0x15f   : > { %4496 = vmatprep.mubr.f32.mxu1 %v2102_v55  ;;  %4481 = vmatprep.subr.mxu0 %v5435_v39  ;;  %v5675_v55 = vand.u32 4294901760, %v5476_v48 }
 0x160   : > { %4509 = vmatprep.subr.mxu1 %v5385_v8  ;;  %4482 = vmatpush3.msra.mxu0 %v5435_v39  ;;  %v5598_v39 = vsub.f32 %v2605_v12, %v5581_v61  ;;  %v5610_v26 = vsub.f32 %v2608_v62, %v5591_v38  ;;  %v3324_v12 = vand.u32 4294901760, %v3323_v2 }
 0x161   : > { %4467 = vmatmul.mubr.f32.gmra.mxu0 %v2114_v54  ;;  %4497 = vmatmul.mubr.f32.gmra.mxu1 %v2112_v51  ;;  %v5692_v51 = vsub.f32 %v5476_v48, %v5675_v55  ;;  %v3301_v48 = vsub.f32 %v5462_v29, %v5684_v16 }
 0x162   : > { %4483 = vmatprep.mubr.f32.mxu0 %v5490_v20  ;;  %4510 = vmatpush3.msra.mxu1 %v5385_v8  ;;  %v2756_v8 = vand.u32 4294901760, %v2755_v47  ;;  %v2685_v10 = vand.u32 4294901760, %v5598_v39  ;;  %v2695_v21 = vand.u32 4294901760, %v5610_v26 }
 0x163   : > { %4513 = vmatprep.mubr.f32.mxu1 %v5467_v50  ;;  %4511 = vmatprep.subr.mxu1 %v5399_v6  ;;  %v3292_v7 = vand.u32 4294901760, %v5692_v51  ;;  %v3302_v29 = vand.u32 4294901760, %v3301_v48 }
 0x164   : > { %4512 = vmatpush3.msra.mxu1 %v5399_v6  ;;  %4499 = vmatprep.subr.mxu0 %v5450_v18  ;;  %v2763_v6 = vand.u32 4294901760, %v2762_v27  ;;  %v2696_v41 = vsub.f32 %v5610_v26, %v2695_v21 }
 0x165   : > { %4484 = vmatmul.mubr.f32.vlgmr.msra.gmra.mxu0 %v5504_v42  ;;  %4514 = vmatmul.mubr.f32.vlgmr.msra.gmra.mxu1 %v5480_v13  ;;  %v3303_v63 = vsub.f32 %v3301_v48, %v3302_v29 }
 0x166   : > { %4486 = vmatprep.mubr.f32.mxu0 %v5511_v56  ;;  %4500 = vmatpush3.msra.mxu0 %v5450_v18  ;;  %v3935_v18 = vld [vmem:[%s5947_s2 + $0x38] sm:$0xff]  ;;  %v2697_v56 = vand.u32 4294901760, %v2696_v41 }
 0x167   : > { %4516 = vmatprep.mubr.f32.mxu1 %v5493_v52  ;;  %4501 = vmatprep.subr.mxu0 %v5458_v0  ;;  %v5635_v20 = vand.u32 4294901760, %v3935_v18  ;;  %v3304_v31 = vand.u32 4294901760, %v3303_v63 }
 0x168   : > { %4529 = vmatprep.subr.mxu1 %v2756_v8  ;;  %4502 = vmatpush3.msra.mxu0 %v5458_v0  ;;  %v2686_v0 = vsub.f32 %v5598_v39, %v2685_v10 }
 0x169   : > { %4487 = vmatmul.mubr.f32.gmra.mxu0 %v5523_v46  ;;  %4517 = vmatmul.mubr.f32.gmra.mxu1 %v5506_v33  ;;  %v2717_v46 = vand.u32 4294901760, %v2716_v28 }
 0x16a   : > { %4503 = vmatprep.mubr.f32.mxu0 %v5467_v50  ;;  %4530 = vmatpush3.msra.mxu1 %v2756_v8  ;;  %v3934_v50 = vld [vmem:[%s5947_s2 + $0x30] sm:$0xff] }
 0x16b   : > { %4533 = vmatprep.mubr.f32.mxu1 %v5581_v61  ;;  %4531 = vmatprep.subr.mxu1 %v2763_v6  ;;  %v5648_v42 = vand.u32 4294901760, %v3934_v50 }
 0x16c   : > { %4532 = vmatpush3.msra.mxu1 %v2763_v6  ;;  %4519 = vmatprep.subr.mxu0 %v5529_v43 }
 0x16d   : > { %4504 = vmatmul.mubr.f32.vlgmr.msra.gmra.mxu0 %v5480_v13  ;;  %4534 = vmatmul.mubr.f32.vlgmr.msra.gmra.mxu1 %v5591_v38  ;;  %v2687_v13 = vand.u32 4294901760, %v2686_v0  ;;  %v5662_v14 = vsub.f32 %v3934_v50, %v5648_v42 }
 0x16e   : > { %4506 = vmatprep.mubr.f32.mxu0 %v5493_v52  ;;  %4520 = vmatpush3.msra.mxu0 %v5529_v43  ;;  %v5654_v52 = vsub.f32 %v3935_v18, %v5635_v20 }
 0x16f   : > { %4536 = vmatprep.mubr.f32.mxu1 %v5601_v37  ;;  %4521 = vmatprep.subr.mxu0 %v5544_v32  ;;  %v5672_v24 = vand.u32 4294901760, %v5662_v14 }
 0x170   : > { %4549 = vmatprep.subr.mxu1 %v5529_v43  ;;  %4522 = vmatpush3.msra.mxu0 %v5544_v32 }
 0x171   : > { %4507 = vmatmul.mubr.f32.gmra.mxu0 %v5506_v33  ;;  %4537 = vmatmul.mubr.f32.gmra.mxu1 %v5612_v59  ;;  %v5667_v33 = vand.u32 4294901760, %v5654_v52  ;;  %v3369_v60 = vsub.f32 %v5662_v14, %v5672_v24 }
 0x172   : > { %4523 = vmatprep.mubr.f32.mxu0 %v2687_v13  ;;  %4550 = vmatpush3.msra.mxu1 %v5529_v43 }
 0x173   : > { %4553 = vmatprep.mubr.f32.mxu1 %v2685_v10  ;;  %4551 = vmatprep.subr.mxu1 %v5544_v32  ;;  %v3362_v1 = vsub.f32 %v5654_v52, %v5667_v33 }
 0x174   : > { %4552 = vmatpush3.msra.mxu1 %v5544_v32  ;;  %4539 = vmatprep.subr.mxu0 %v5550_v19 }
 0x175   : > { %4524 = vmatmul.mubr.f32.vlgmr.msra.gmra.mxu0 %v2697_v56  ;;  %4554 = vmatmul.mubr.f32.vlgmr.msra.gmra.mxu1 %v2695_v21 }
 0x176   : > { %4526 = vmatprep.mubr.f32.mxu0 %v2707_v5  ;;  %4540 = vmatpush3.msra.mxu0 %v5550_v19  ;;  %v3311_v19 = vsub.f32 %v5497_v49, %v5695_v45  ;;  %v3293_v49 = vsub.f32 %v5692_v51, %v3292_v7 }
 0x177   : > { %4556 = vmatprep.mubr.f32.mxu1 %v2705_v15  ;;  %4541 = vmatprep.subr.mxu0 %v5563_v9 }
 0x178   : > { %4569 = vmatprep.subr.mxu1 %v5529_v43  ;;  %4542 = vmatpush3.msra.mxu0 %v5563_v9  ;;  %v3312_v34 = vand.u32 4294901760, %v3311_v19  ;;  %v3294_v40 = vand.u32 4294901760, %v3293_v49 }
 0x179   : > { %4527 = vmatmul.mubr.f32.gmra.mxu0 %v2717_v46  ;;  %4557 = vmatmul.mubr.f32.gmra.mxu1 %v2715_v53 }
 0x17a   : > { %4543 = vmatprep.mubr.f32.mxu0 %v5598_v39  ;;  %4570 = vmatpush3.msra.mxu1 %v5529_v43  ;;  %v3363_v43 = vand.u32 4294901760, %v3362_v1  ;;  %v3313_v9 = vsub.f32 %v3311_v19, %v3312_v34 }
 0x17b   : > { %4573 = vmatprep.mubr.f32.mxu1 %v5581_v61  ;;  %4571 = vmatprep.subr.mxu1 %v5544_v32 }
 0x17c   : > { %4572 = vmatpush3.msra.mxu1 %v5544_v32  ;;  %4559 = vmatprep.subr.mxu0 %v5569_v4  ;;  %v3370_v32 = vand.u32 4294901760, %v3369_v60 }
 0x17d   : > { %4544 = vmatmul.mubr.f32.vlgmr.msra.gmra.mxu0 %v5610_v26  ;;  %4574 = vmatmul.mubr.f32.vlgmr.msra.gmra.mxu1 %v5591_v38 }
 0x17e   : > { %4546 = vmatprep.mubr.f32.mxu0 %v5617_v36  ;;  %4560 = vmatpush3.msra.mxu0 %v5569_v4  ;;  %v3314_v4 = vand.u32 4294901760, %v3313_v9 }
 0x17f   : > { %4576 = vmatprep.mubr.f32.mxu1 %v5601_v37  ;;  %4561 = vmatprep.subr.mxu0 %v5578_v3 }
 0x180   : > { %4589 = vmatprep.subr.mxu1 %v3363_v43  ;;  %4562 = vmatpush3.msra.mxu0 %v5578_v3 }
 0x181   : > { %4547 = vmatmul.mubr.f32.gmra.mxu0 %v5629_v25  ;;  %4577 = vmatmul.mubr.f32.gmra.mxu1 %v5612_v59 }
 0x182   : > { %4563 = vmatprep.mubr.f32.mxu0 %v5581_v61  ;;  %4590 = vmatpush3.msra.mxu1 %v3363_v43 }
 0x183   : > { %4593 = vmatprep.mubr.f32.mxu1 %v5675_v55  ;;  %4591 = vmatprep.subr.mxu1 %v3370_v32 }
 0x184   : > { %4592 = vmatpush3.msra.mxu1 %v3370_v32  ;;  %4579 = vmatprep.subr.mxu0 %v5635_v20 }
 0x185   : > { %4564 = vmatmul.mubr.f32.vlgmr.msra.gmra.mxu0 %v5591_v38  ;;  %4594 = vmatmul.mubr.f32.vlgmr.msra.gmra.mxu1 %v5684_v16 }
 0x186   : > { %4566 = vmatprep.mubr.f32.mxu0 %v5601_v37  ;;  %4580 = vmatpush3.msra.mxu0 %v5635_v20 }
 0x187   : > { %4596 = vmatprep.mubr.f32.mxu1 %v5695_v45  ;;  %4581 = vmatprep.subr.mxu0 %v5648_v42 }
 0x188   : > { %4609 = vmatprep.subr.mxu1 %v5635_v20  ;;  %4582 = vmatpush3.msra.mxu0 %v5648_v42 }
 0x189   : > { %4567 = vmatmul.mubr.f32.gmra.mxu0 %v5612_v59  ;;  %4597 = vmatmul.mubr.f32.gmra.mxu1 %v5706_v57 }
 0x18a   : > { %4583 = vmatprep.mubr.f32.mxu0 %v3294_v40  ;;  %4610 = vmatpush3.msra.mxu1 %v5635_v20 }
 0x18b   : > { %4613 = vmatprep.mubr.f32.mxu1 %v3292_v7  ;;  %4611 = vmatprep.subr.mxu1 %v5648_v42 }
 0x18c   : > { %4612 = vmatpush3.msra.mxu1 %v5648_v42  ;;  %4599 = vmatprep.subr.mxu0 %v5654_v52 }
 0x18d   : > { %4584 = vmatmul.mubr.f32.vlgmr.msra.gmra.mxu0 %v3304_v31  ;;  %4614 = vmatmul.mubr.f32.vlgmr.msra.gmra.mxu1 %v3302_v29 }
 0x18e   : > { %4586 = vmatprep.mubr.f32.mxu0 %v3314_v4  ;;  %4600 = vmatpush3.msra.mxu0 %v5654_v52 }
 0x18f   : > { %4616 = vmatprep.mubr.f32.mxu1 %v3312_v34  ;;  %4601 = vmatprep.subr.mxu0 %v5662_v14 }
 0x190   : > { %4629 = vmatprep.subr.mxu1 %v5635_v20  ;;  %4602 = vmatpush3.msra.mxu0 %v5662_v14 }
 0x191   : > { %4587 = vmatmul.mubr.f32.gmra.mxu0 %v3324_v12  ;;  %4617 = vmatmul.mubr.f32.gmra.mxu1 %v3322_v23 }
 0x192   : > { %4603 = vmatprep.mubr.f32.mxu0 %v5692_v51  ;;  %4630 = vmatpush3.msra.mxu1 %v5635_v20 }
 0x193   : > { %4633 = vmatprep.mubr.f32.mxu1 %v5675_v55  ;;  %4631 = vmatprep.subr.mxu1 %v5648_v42 }
 0x194   : > { %4632 = vmatpush3.msra.mxu1 %v5648_v42  ;;  %4619 = vmatprep.subr.mxu0 %v5667_v33 }
 0x195   : > { %4604 = vmatmul.mubr.f32.vlgmr.msra.gmra.mxu0 %v3301_v48  ;;  %4634 = vmatmul.mubr.f32.vlgmr.msra.gmra.mxu1 %v5684_v16 }
 0x196   : > { %4606 = vmatprep.mubr.f32.mxu0 %v3311_v19  ;;  %4620 = vmatpush3.msra.mxu0 %v5667_v33 }
 0x197   : > { %4636 = vmatprep.mubr.f32.mxu1 %v5695_v45  ;;  %4621 = vmatprep.subr.mxu0 %v5672_v24 }
 0x198   : > { %4622 = vmatpush3.msra.mxu0 %v5672_v24 }
 0x199   : > { %4607 = vmatmul.mubr.f32.gmra.mxu0 %v3321_v30  ;;  %4637 = vmatmul.mubr.f32.gmra.mxu1 %v5706_v57 }
 0x19a   : > { %4623 = vmatprep.mubr.f32.mxu0 %v5675_v55 }
 0x19d   : > { %4624 = vmatmul.mubr.f32.vlgmr.msra.gmra.mxu0 %v5684_v16 }
 0x19e   : > { %4626 = vmatprep.mubr.f32.mxu0 %v5695_v45 }
 0x1a1   : > { %4627 = vmatmul.mubr.f32.gmra.mxu0 %v5706_v57 }
 0x1fd   : > { %v4415_v58 = vpop.f32.mrf.mxu1 }
 0x1ff   : > { %v1597_v44 = vpop.f32.mrf.mxu1 }
 0x201   : > { %v4418_v54 = vpop.f32.mrf.mxu1 }
 0x203   : > { %v1609_v3 = vpop.f32.mrf.mxu1 }
 0x205   : > { %v4405_v62 = vpop.f32.mrf.mxu0  ;;  %v5756_v61 = vpop.f32.mrf.mxu1 }
 0x206   : > { %v5758_v35 = vadd.f32 %v4415_v58, %v4405_v62 }
 0x207   : > { %v1486_v47 = vpop.f32.mrf.mxu0  ;;  %v5760_v17 = vpop.f32.mrf.mxu1 }
 0x208   : > { %v1598_v38 = vadd.f32 %v1597_v44, %v1486_v47 }
 0x209   : > { %v4408_v27 = vpop.f32.mrf.mxu0  ;;  %v5762_v39 = vpop.f32.mrf.mxu1 }
 0x20a   : > { %v1616_v11 = vadd.f32 %v4418_v54, %v4408_v27 }
 0x20b   : > { %v1506_v37 = vpop.f32.mrf.mxu0  ;;  %v5764_v8 = vpop.f32.mrf.mxu1 }
 0x20c   : > { %v5766_v26 = vadd.f32 %v1609_v3, %v1506_v37 }
 0x20d   : > { %v4425_v59 = vpop.f32.mrf.mxu0  ;;  %v5768_v6 = vpop.f32.mrf.mxu1 }
 0x20e   : > { %v1699_v27 = vadd.f32 %v4425_v59, %v5758_v35 }
 0x20f   : > { %v1691_v36 = vpop.f32.mrf.mxu0  ;;  %v5770_v10 = vpop.f32.mrf.mxu1 }
 0x210   : > { %v1692_v37 = vadd.f32 %v1691_v36, %v1598_v38 }
 0x211   : > { %v4428_v18 = vpop.f32.mrf.mxu0  ;;  %v5772_v21 = vpop.f32.mrf.mxu1 }
 0x213   : > { %v1705_v25 = vpop.f32.mrf.mxu0  ;;  %v5774_v0 = vpop.f32.mrf.mxu1 }
 0x215   : > { %v4445_v15 = vpop.f32.mrf.mxu0  ;;  %v5776_v20 = vpop.f32.mrf.mxu1 }
 0x217   : > { %v1888_v50 = vpop.f32.mrf.mxu0  ;;  %v5778_v41 = vpop.f32.mrf.mxu1 }
 0x219   : > { %v4448_v53 = vpop.f32.mrf.mxu0  ;;  %v5780_v42 = vpop.f32.mrf.mxu1 }
 0x21b   : > { %v1900_v13 = vpop.f32.mrf.mxu0  ;;  %v5782_v22 = vpop.f32.mrf.mxu1 }
 0x21d   : > { %v5784_v52 = vpop.f32.mrf.mxu0  ;;  %v5786_v56 = vpop.f32.mrf.mxu1 }
 0x21f   : > { %v5788_v28 = vpop.f32.mrf.mxu0  ;;  %v5790_v14 = vpop.f32.mrf.mxu1 }
 0x221   : > { %v5792_v5 = vpop.f32.mrf.mxu0  ;;  %v5794_v33 = vpop.f32.mrf.mxu1 }
 0x222   : > { %5954 = vst [vmem:[#allocation5_spill] sm:$0xff] %v5794_v33 }
 0x223   : > { %v5796_v46 = vpop.f32.mrf.mxu0  ;;  %v5798_v24 = vpop.f32.mrf.mxu1 }
 0x224   : > { %5955 = vst [vmem:[#allocation6_spill] sm:$0xff] %v5798_v24  ;;  %v1796_v24 = vadd.f32 %v5756_v61, %v1699_v27 }
 0x225   : > { %v5800_v55 = vpop.f32.mrf.mxu0  ;;  %v5802_v1 = vpop.f32.mrf.mxu1 }
 0x226   : > { %5956 = vst [vmem:[#allocation7_spill] sm:$0xff] %v5802_v1  ;;  %v1895_v33 = vadd.f32 %v4445_v15, %v1796_v24 }
 0x227   : > { %v5804_v16 = vpop.f32.mrf.mxu0  ;;  %v5806_v60 = vpop.f32.mrf.mxu1 }
 0x228   : > { %5957 = vst [vmem:[#allocation8_spill] sm:$0xff] %v5806_v60  ;;  %v1986_v61 = vadd.f32 %v5768_v6, %v1895_v33 }
 0x229   : > { %v5808_v51 = vpop.f32.mrf.mxu0  ;;  %v5810_v45 = vpop.f32.mrf.mxu1 }
 0x22a   : > { %5958 = vst [vmem:[#allocation9_spill] sm:$0xff] %v5810_v45  ;;  %v2097_v15 = vadd.f32 %v5784_v52, %v1986_v61 }
 0x22b   : > { %v5812_v43 = vpop.f32.mrf.mxu0  ;;  %v5814_v48 = vpop.f32.mrf.mxu1 }
 0x22c   : > { %5959 = vst [vmem:[#allocation10_spill] sm:$0xff] %v5814_v48 }
 0x22d   : > { %v5816_v57 = vpop.f32.mrf.mxu0  ;;  %v4535_v32 = vpop.f32.mrf.mxu1 }
 0x22f   : > { %v5818_v19 = vpop.f32.mrf.mxu0  ;;  %v2800_v7 = vpop.f32.mrf.mxu1 }
 0x230   : > { %5960 = vst [vmem:[#allocation11_spill] sm:$0xff] %v5818_v19 }
 0x231   : > { %v5820_v29 = vpop.f32.mrf.mxu0  ;;  %v4538_v30 = vpop.f32.mrf.mxu1 }
 0x232   : > { %5961 = vst [vmem:[#allocation12_spill] sm:$0xff] %v5820_v29  ;;  %v1706_v29 = vadd.f32 %v1705_v25, %v5766_v26 }
 0x233   : > { %v5822_v49 = vpop.f32.mrf.mxu0  ;;  %v2812_v34 = vpop.f32.mrf.mxu1 }
 0x234   : > { %5962 = vst [vmem:[#allocation13_spill] sm:$0xff] %v5822_v49  ;;  %v1713_v49 = vadd.f32 %v4428_v18, %v1616_v11  ;;  %v1804_v36 = vadd.f32 %v5764_v8, %v1706_v29 }
 0x235   : > { %v4525_v63 = vpop.f32.mrf.mxu0  ;;  %v5824_v23 = vpop.f32.mrf.mxu1 }
 0x236   : > { %v1901_v27 = vadd.f32 %v1900_v13, %v1804_v36 }
 0x237   : > { %v2689_v40 = vpop.f32.mrf.mxu0  ;;  %v5826_v9 = vpop.f32.mrf.mxu1  ;;  %v5967_v61 = vld [vmem:[#allocation11_spill] sm:$0xff] }
 0x238   : > { %v1992_v29 = vadd.f32 %v5774_v0, %v1901_v27 }
 0x239   : > { %v4528_v31 = vpop.f32.mrf.mxu0  ;;  %v5828_v2 = vpop.f32.mrf.mxu1 }
 0x23a   : > { %v2107_v52 = vadd.f32 %v5796_v46, %v1992_v29 }
 0x23b   : > { %v2709_v4 = vpop.f32.mrf.mxu0  ;;  %v5830_v12 = vpop.f32.mrf.mxu1 }
 0x23c   : > { %5963 = vst [vmem:[#allocation14_spill] sm:$0xff] %v5830_v12 }
 0x23d   : > { %v4545_v58 = vpop.f32.mrf.mxu0  ;;  %v5832_v44 = vpop.f32.mrf.mxu1 }
 0x23e   : > { %5964 = vst [vmem:[#allocation15_spill] sm:$0xff] %v5832_v44  ;;  %v1788_v44 = vadd.f32 %v5760_v17, %v1692_v37 }
 0x23f   : > { %v2894_v54 = vpop.f32.mrf.mxu0  ;;  %v5834_v3 = vpop.f32.mrf.mxu1 }
 0x240   : > { %5965 = vst [vmem:[#allocation16_spill] sm:$0xff] %v5834_v3  ;;  %v1889_v19 = vadd.f32 %v1888_v50, %v1788_v44  ;;  %v2801_v44 = vadd.f32 %v2800_v7, %v2689_v40  ;;  %v2813_v7 = vadd.f32 %v2812_v34, %v2709_v4 }
 0x241   : > { %v4548_v62 = vpop.f32.mrf.mxu0  ;;  %v5836_v47 = vpop.f32.mrf.mxu1 }
 0x242   : > { %5966 = vst [vmem:[#allocation17_spill] sm:$0xff] %v5836_v47  ;;  %v1812_v47 = vadd.f32 %v5762_v39, %v1713_v49  ;;  %v1980_v26 = vadd.f32 %v5770_v10, %v1889_v19  ;;  %v2807_v49 = vadd.f32 %v4535_v32, %v4525_v63  ;;  %v2204_v10 = vadd.f32 %v5776_v20, %v2097_v15 }
 0x243   : > { %v2908_v48 = vpop.f32.mrf.mxu0  ;;  %v5839_v45 = vpop.f32.mrf.mxu1  ;;  %v2819_v19 = vadd.f32 %v4538_v30, %v4528_v31 }
 0x244   : > { %v1907_v59 = vadd.f32 %v4448_v53, %v1812_v47  ;;  %v2087_v50 = vadd.f32 %v5788_v28, %v1980_v26  ;;  %v2902_v33 = vadd.f32 %v4545_v58, %v2807_v49  ;;  %v2299_v32 = vadd.f32 %v5800_v55, %v2204_v10  ;;  %v5969_v26 = vld [vmem:[#allocation14_spill] sm:$0xff] }
 0x245   : > { %v4565_v60 = vpop.f32.mrf.mxu0  ;;  %v4595_v1 = vpop.f32.mrf.mxu1  ;;  %v2916_v63 = vadd.f32 %v4548_v62, %v2819_v19  ;;  %v2909_v30 = vadd.f32 %v2908_v48, %v2813_v7 }
 0x246   : > { %v1998_v39 = vadd.f32 %v5772_v21, %v1907_v59  ;;  %v2198_v28 = vadd.f32 %v5778_v41, %v2087_v50  ;;  %v2895_v21 = vadd.f32 %v2894_v54, %v2801_v44  ;;  %v2999_v20 = vadd.f32 %v5824_v23, %v2902_v33 }
 0x247   : > { %v3091_v12 = vpop.f32.mrf.mxu0  ;;  %v3407_v3 = vpop.f32.mrf.mxu1  ;;  %v2210_v41 = vadd.f32 %v5782_v22, %v2107_v52  ;;  %v2396_v55 = vadd.f32 %v5786_v56, %v2299_v32  ;;  %v5973_v49 = vld [vmem:[#allocation16_spill] sm:$0xff] }
 0x248   : > { %v2117_v8 = vadd.f32 %v5792_v5, %v1998_v39  ;;  %v2292_v5 = vadd.f32 %v5804_v16, %v2198_v28  ;;  %v2991_v31 = vadd.f32 %v5826_v9, %v2895_v21  ;;  %v3098_v16 = vadd.f32 %v4565_v60, %v2999_v20  ;;  %v3822_v9 = vpop.permute.xlu0 %3821  ;;  %v5968_v60 = vld [vmem:[#allocation5_spill] sm:$0xff]  ;;  %v5971_v39 = vld [vmem:[#allocation12_spill] sm:$0xff] }
 0x249   : > { %v4568_v35 = vpop.f32.mrf.mxu0  ;;  %v4598_v38 = vpop.f32.mrf.mxu1  ;;  %v2306_v34 = vadd.f32 %v5812_v43, %v2210_v41  ;;  %v2495_v22 = vadd.f32 %v5816_v57, %v2396_v55  ;;  %v3007_v43 = vadd.f32 %v5969_v26, %v2909_v30  ;;  %v5972_v57 = vld [vmem:[#allocation6_spill] sm:$0xff] }
 0x24a   : > { %v2216_v0 = vadd.f32 %v5780_v42, %v2117_v8  ;;  %v2388_v4 = vadd.f32 %v5790_v14, %v2292_v5  ;;  %v3092_v62 = vadd.f32 %v3091_v12, %v2991_v31  ;;  %v5970_v14 = vld [vmem:[#allocation15_spill] sm:$0xff] }
 0x24b   : > { %v5846_v11 = vpop.f32.mrf.mxu0  ;;  %v3419_v18 = vpop.f32.mrf.mxu1  ;;  %v3189_v12 = vadd.f32 %v5970_v14, %v3098_v16 }
 0x24c   : > { %v2313_v46 = vadd.f32 %v5808_v51, %v2216_v0  ;;  %v2489_v56 = vadd.f32 %v5967_v61, %v2388_v4  ;;  %v3183_v8 = vadd.f32 %v5973_v49, %v3092_v62  ;;  %v3104_v29 = vadd.f32 %v5846_v11, %v3007_v43 }
 0x24d   : > { %v4585_v17 = vpop.f32.mrf.mxu0  ;;  %v4615_v25 = vpop.f32.mrf.mxu1 }
 0x24e   : > { %v3414_v58 = vadd.f32 %v4595_v1, %v4585_v17  ;;  %v3015_v1 = vadd.f32 %v5828_v2, %v2916_v63  ;;  %v3832_v63 = vpop.permute.xlu1 %3831 }
 0x24f   : > { %v3296_v24 = vpop.f32.mrf.mxu0  ;;  %v3597_v53 = vpop.f32.mrf.mxu1 }
 0x250   : > { %v3408_v59 = vadd.f32 %v3407_v3, %v3296_v24  ;;  %v2412_v3 = vadd.f32 %v5968_v60, %v2313_v46  ;;  %v3110_v27 = vadd.f32 %v4568_v35, %v3015_v1  ;;  %v5974_v35 = vld [vmem:[#allocation7_spill] sm:$0xff] }
 0x251   : > { %v4588_v6 = vpop.f32.mrf.mxu0  ;;  %v5855_v13 = vpop.f32.mrf.mxu1  ;;  %v2586_v10 = vadd.f32 %v5974_v35, %v2495_v22 }
 0x252   : > { %v3426_v48 = vadd.f32 %v4598_v38, %v4588_v6  ;;  %v2507_v24 = vadd.f32 %v5971_v39, %v2412_v3  ;;  %v2404_v38 = vadd.f32 %v5972_v57, %v2306_v34 }
 0x253   : > { %v3316_v47 = vpop.f32.mrf.mxu0  ;;  %v3613_v40 = vpop.f32.mrf.mxu1  ;;  %v3205_v20 = vadd.f32 %v3189_v12, %v2586_v10 }
 0x254   : > { %v3420_v15 = vadd.f32 %v3419_v18, %v3316_v47  ;;  %v5975_v18 = vld [vmem:[#allocation8_spill] sm:$0xff]  ;;  %v5977_v47 = vld [vmem:[#allocation17_spill] sm:$0xff] }
 0x255   : > { %v4605_v37 = vpop.f32.mrf.mxu0  ;;  %v4635_v23 = vpop.f32.mrf.mxu1  ;;  %v2580_v19 = vadd.f32 %v5975_v18, %v2489_v56  ;;  %v3201_v32 = vadd.f32 %v5977_v47, %v3110_v27 }
 0x256   : > { %v3509_v42 = vadd.f32 %v4605_v37, %v3414_v58  ;;  %v3827_v37 = vpop.permute.xlu0 %3826  ;;  %v5978_v58 = vld [vmem:[#allocation9_spill] sm:$0xff] }
 0x257   : > { %v3501_v54 = vpop.f32.mrf.mxu0  ;;  %v3789_v44 = vpop.f32.mrf.mxu1  ;;  %v2598_v46 = vadd.f32 %v5978_v58, %v2507_v24  ;;  %v3204_v41 = vadd.f32 %v3183_v8, %v2580_v19 }
 0x258   : > { %v3502_v36 = vadd.f32 %v3501_v54, %v3408_v59  ;;  %v3606_v50 = vadd.f32 %v4615_v25, %v3509_v42  ;;  %v5976_v25 = vld [vmem:[#allocation13_spill] sm:$0xff]  ;;  %v5979_v42 = vld [vmem:[#allocation10_spill] sm:$0xff] }
 0x259   : > { %v4608_v51 = vpop.f32.mrf.mxu0  ;;  %v2501_v21 = vadd.f32 %v5976_v25, %v2404_v38  ;;  %v4638_v30 = vpop.f32.mrf.mxu1  ;;  %v3207_v62 = vadd.f32 %v3201_v32, %v2598_v46 }
 0x25a   : > { %v3523_v2 = vadd.f32 %v4608_v51, %v3426_v48  ;;  %v3598_v28 = vadd.f32 %v3597_v53, %v3502_v36  ;;  %v3195_v53 = vadd.f32 %v5839_v45, %v3104_v29 }
 0x25b   : > { %v3515_v17 = vpop.f32.mrf.mxu0  ;;  %v2592_v34 = vadd.f32 %v5979_v42, %v2501_v21  ;;  %v3801_v22 = vpop.f32.mrf.mxu1 }
 0x25c   : > { %v3516_v33 = vadd.f32 %v3515_v17, %v3420_v15  ;;  %v3622_v11 = vadd.f32 %v5855_v13, %v3523_v2 }
 0x25d   : > { %v4625_v6 = vpop.f32.mrf.mxu0  ;;  %v3206_v48 = vadd.f32 %v3195_v53, %v2592_v34 }
 0x25e   : > { %v3705_v52 = vadd.f32 %v4625_v6, %v3606_v50  ;;  %v3614_v59 = vadd.f32 %v3613_v40, %v3516_v33  ;;  %v3837_v40 = vpop.permute.xlu1 %3836 }
 0x25f   : > { %v3698_v5 = vpop.f32.mrf.mxu0 }
 0x260   : > { %v3796_v0 = vadd.f32 %v4635_v23, %v3705_v52  ;;  %v3699_v7 = vadd.f32 %v3698_v5, %v3598_v28 }
 0x261   : > { %v4628_v31 = vpop.f32.mrf.mxu0 }
 0x262   : > { %v3790_v54 = vadd.f32 %v3789_v44, %v3699_v7  ;;  %v3717_v55 = vadd.f32 %v4628_v31, %v3622_v11  ;;  %v3812_v16 = vadd.f32 %v3796_v0, %v3205_v20 }
 0x263   : > { %v3710_v4 = vpop.f32.mrf.mxu0 }
 0x264   : > { %v3811_v13 = vadd.f32 %v3790_v54, %v3204_v41  ;;  %v3808_v1 = vadd.f32 %v4638_v30, %v3717_v55  ;;  %v3840_v23 = vadd.f32 %v3827_v37, %v3812_v16  ;;  %v3711_v51 = vadd.f32 %v3710_v4, %v3614_v59 }
 0x266   : > { %v3839_v36 = vadd.f32 %v3822_v9, %v3811_v13  ;;  %3844 = vst.msk [vmem:[%s190_s13 + $0x8] sm:$0xff] %vm216_vm0, %v3840_v23  ;;  %v3802_v45 = vadd.f32 %v3801_v22, %v3711_v51  ;;  %v3814_v61 = vadd.f32 %v3808_v1, %v3207_v62 }
 0x268   : > { %3843 = vst.msk [vmem:[%s190_s13] sm:$0xff] %vm216_vm0, %v3839_v36  ;;  %v3813_v56 = vadd.f32 %v3802_v45, %v3206_v48  ;;  %v3842_v60 = vadd.f32 %v3837_v40, %v3814_v61 }
 0x26a   : > { %v3841_v9 = vadd.f32 %v3832_v63, %v3813_v56  ;;  %3846 = vst.msk [vmem:[%s190_s13 + $0x18] sm:$0xff] %vm216_vm0, %v3842_v60 }
 0x26c   : > { %3845 = vst.msk [vmem:[%s190_s13 + $0x10] sm:$0xff] %vm216_vm0, %v3841_v9 }
 0x26d   : > { %4696 = shalt.err (!%p4693_p3)
}
 0x26e   : > { %s4697_s6 = scalar_lea.hbm %s5897_s27, 512  ;;  %s4701_s9 = scalar_lea.hbm %s5949_s4, 1024 }
 0x26f   : > { %p4698_p4 = scmp.ne.s32.totalorder %s5897_s27, %s4697_s6  ;;  %p4702_p9 = scmp.lt.s32.totalorder %s5897_s27, %s5949_s4 }
 0x270   : > { %p4703_p10 = scmp.lt.s32.totalorder %s4701_s9, %s4697_s6 }
 0x271   : > { %p4699_p7 = pnand %p4698_p4, %p4812_p5 }
 0x272   : > { %p4704_p11 = por %p4703_p10, %p4702_p9 }
 0x273   : > { %p4700_p8 = pneg %p4699_p7 }
 0x275   : > { %p4705_p12 = pnand %p4704_p11, %p4700_p8 }
 0x277   : > { %4708 = shalt.err (!%p4705_p12)
}
 0x278   : > { %s4747_s12 = smov 128   ;;  %s4748_s13 = smov 8  }
 0x279   : > { %4639 = dma.vmem_to_hbm [thread:$0]  (%p4812_p5), %s5899_s20, 512, %s5897_s27, %s5905_s19, %s4747_s12, %s4747_s12, %s4748_s13  }
 0x27a PF: > { %p4645_p13 = scmp.ge.s32.totalorder %s4743_s18, 2  ;;  %s3876_s14 = sand.u32 1, %s4731_s15  }
 0x27b   : > { %s3877_s22 = scalar_lea.sflag [#allocation3], %s3876_s14 }
 0x27c   : > { %p4642_p0 = pnand %p4645_p13, %p4816_p6 }
 0x27e   : > { %p4643_p1 = pneg %p4642_p0 }
 0x280   : > { %4726 = dma.done.wait (%p4643_p1), %s3877_s22, 512  }
 0x281   : > { %4728 = vsyncadd (%p4643_p1), %s3877_s22, 4294966784  ;;  %p14_p2 = scmp.ge.s32.totalorder %s4799_s21, 4   ;;  %s5980_s15 = smov %s4735_s16 }
 0x282   : > { %s5981_s16 = smov %s4739_s17  ;;  %s5982_s17 = smov %s4810_s24 }
 0x283   : > { %s5983_s18 = smov %s4799_s21  ;;  %16 = sbr.rel (!%p14_p2) target bundleno = 3 (0x3), region = 74 }
 0x288   :  { %3882 = vsyncpa [#allocation3], 1 }
 0x289   :  { %3884 = vsyncpa [#allocation3 + $0x1], 1 }

</bundles_post_ra>
